<compile_context>
chip_gen: v6e
topology: v6e:2x2x1
jax: 0.10.0
libtpu: 0.0.40
codegen_flags: <defaults>
</compile_context>

<pallas_src>
import functools

import jax
import jax.numpy as jnp
from jax.experimental import pallas as pl
from jax.experimental.pallas import tpu as pltpu

D_MODEL = 64
NUM_HEADS = 8
NUM_GROUPS = 2
DEPTH = D_MODEL // NUM_HEADS          # 8
REP = NUM_HEADS // NUM_GROUPS         # 4 heads per KV group
KV_DIM = 2 * DEPTH * NUM_GROUPS       # 32
LANE = 128                            # TPU lane width


def _round_up(x, m):
    return (x + m - 1) // m * m


def _choose_tq(seq, kp, vmem_budget=20 * 1024 * 1024):
    """Largest power-of-two query tile <= 256 that (a) isn't much bigger than
    the 8-aligned sequence and (b) keeps the double-buffered attention tile
    (H * TQ * KP * 4 bytes, x2 buffers) inside a per-step VMEM budget.  The
    budget is sized for v7x's 64 MiB physical / ~32 MiB scoped VMEM; v5e/v6e
    (128 MiB) trivially satisfy it too."""
    tq = 256
    while tq > 8 and tq // 2 >= _round_up(seq, 8):
        tq //= 2
    while tq > 8 and 2 * NUM_HEADS * tq * kp * 4 > vmem_budget:
        tq //= 2
    return tq


def gqa_kernel(q_ref, k_ref, wq_ref, bq_ref, wkv_ref, bkv_ref, wd_ref, bd_ref,
               out_ref, attn_ref, kv_ref, *, seq, kp, tq):
    # Per grid step (b, qi):
    #   q_ref:    [TQ, D]        query tile (rows past seq are host-side zero pad)
    #   k_ref:    [S, D]         un-padded keys of batch b
    #   attn_ref: [H, TQ, KP]    lane-dense attention weights, final head order
    #   out_ref:  [TQ, D]
    #   kv_ref:   [KP, KV_DIM]   VMEM scratch for the projected K/V (pad rows zero)
    scale = 1.0 / jnp.sqrt(jnp.float32(DEPTH))
    neg_inf = jnp.float32(-1e30)

    # 1) Projections.  One MXU call each; weights stay VMEM-resident across the
    #    whole grid (constant index maps -> no re-DMA).
    qp = jnp.dot(q_ref[...], wq_ref[...],
                 preferred_element_type=jnp.float32) + bq_ref[...]      # [TQ, D]
    kv = jnp.dot(k_ref[...], wkv_ref[...],
                 preferred_element_type=jnp.float32) + bkv_ref[...]     # [S, KV_DIM]

    if kp > seq:
        # Only pad *after* the projection: dead key rows never hit the MXU.
        kv_ref[...] = jnp.zeros_like(kv_ref)
        kv_ref[0:seq, :] = kv
        kv_all = kv_ref[...]                                            # [KP, KV_DIM]
        key_valid = jax.lax.broadcasted_iota(jnp.int32, (tq, kp), 1) < seq
    else:
        kv_all = kv                                                     # KP == S
        key_valid = None

    wd_all = wd_ref[...]                                                # [D, D]
    out_acc = jnp.zeros((tq, D_MODEL), jnp.float32)

    # 2) Attention.  Group K/V slices hoisted; heads processed individually so
    #    attention weights are stored directly in final torch head order
    #    (h = r * NUM_GROUPS + g) and the context never needs a lane scatter.
    for g in range(NUM_GROUPS):
        base = g * 2 * DEPTH
        k_g = kv_all[:, base:base + DEPTH]                              # [KP, depth]
        v_g = kv_all[:, base + DEPTH:base + 2 * DEPTH]                  # [KP, depth]
        for r in range(REP):
            h = r * NUM_GROUPS + g                                      # torch head id
            q_h = qp[:, h * DEPTH:(h + 1) * DEPTH]                      # [TQ, depth]

            logits = jax.lax.dot_general(
                q_h, k_g, (((1,), (1,)), ((), ())),
                preferred_element_type=jnp.float32) * scale             # [TQ, KP]
            if key_valid is not None:
                logits = jnp.where(key_valid, logits, neg_inf)

            m = jnp.max(logits, axis=-1, keepdims=True)
            e = jnp.exp(logits - m)
            denom = jnp.sum(e, axis=-1, keepdims=True)
            # Reciprocal-multiply (approx=False keeps the 1e-4 parity check).
            p = e * pl.reciprocal(denom, approx=False)                  # [TQ, KP]

            # Lane-dense store, already in final head order -> no wrapper transpose.
            attn_ref[h, :, :] = p

            pv = jnp.dot(p, v_g, preferred_element_type=jnp.float32)    # [TQ, depth]
            # Fold the head's context straight into the output projection.
            out_acc = out_acc + jnp.dot(
                pv, wd_all[h * DEPTH:(h + 1) * DEPTH, :],
                preferred_element_type=jnp.float32)

    out_ref[...] = out_acc + bd_ref[...]


def gqa_forward(Q, K, V, params):
    # V is accepted for API parity with the PyTorch module but is unused
    # (exactly like the reference forward).
    del V
    B, S, D = Q.shape
    assert D == D_MODEL

    KP = _round_up(S, LANE)        # lane-dense attention-weight stores
    TQ = _choose_tq(S, KP)         # VMEM-budgeted query tile (v7x-safe)
    SP = _round_up(S, TQ)          # padded query length (== S when S % TQ == 0)
    NQ = SP // TQ

    # nn.Linear weights are [out, in]; pre-transpose to [in, out].
    wq_t = params["wq_w"].T                       # [D, D]
    bq = params["wq_b"].reshape(1, D)
    wkv_t = params["wkv_w"].T                     # [D, KV_DIM]
    bkv = params["wkv_b"].reshape(1, KV_DIM)
    wd_t = params["wd_w"].T                       # [D, D]
    bd = params["wd_b"].reshape(1, D)

    q_pad = Q if SP == S else jnp.pad(Q, ((0, 0), (0, SP - S), (0, 0)))

    kernel = functools.partial(gqa_kernel, seq=S, kp=KP, tq=TQ)

    def const_spec(shape):
        return pl.BlockSpec(shape, lambda b, qi: (0,) * len(shape))

    out_pad, attn_pad = pl.pallas_call(
        kernel,
        grid=(B, NQ),
        out_shape=(
            jax.ShapeDtypeStruct((B, SP, D), jnp.float32),
            jax.ShapeDtypeStruct((B, NUM_HEADS, SP, KP), jnp.float32),
        ),
        in_specs=[
            pl.BlockSpec((None, TQ, D), lambda b, qi: (b, qi, 0)),   # Q tile
            pl.BlockSpec((None, S, D), lambda b, qi: (b, 0, 0)),     # K (un-padded)
            const_spec((D, D)), const_spec((1, D)),                  # WQ, bQ
            const_spec((D, KV_DIM)), const_spec((1, KV_DIM)),        # WKV, bKV
            const_spec((D, D)), const_spec((1, D)),                  # Wd, bd
        ],
        out_specs=(
            pl.BlockSpec((None, TQ, D), lambda b, qi: (b, qi, 0)),
            pl.BlockSpec((None, NUM_HEADS, TQ, KP), lambda b, qi: (b, 0, qi, 0)),
        ),
        scratch_shapes=[pltpu.VMEM((KP, KV_DIM), jnp.float32)],
        compiler_params=pltpu.CompilerParams(
            dimension_semantics=("parallel", "parallel"),
            vmem_limit_bytes=32 * 1024 * 1024,
        ),
    )(q_pad, K, wq_t, bq, wkv_t, bkv, wd_t, bd)

    out = out_pad if SP == S else out_pad[:, :S, :]
    attn = attn_pad if (SP == S and KP == S) else attn_pad[:, :, :S, :S]
    return out, attn


def gqa_reference(Q, K, V, params):
    """Pure-JAX reference mirroring the PyTorch forward exactly."""
    del V
    B, S, D = Q.shape
    qp = Q @ params["wq_w"].T + params["wq_b"]
    kv = K @ params["wkv_w"].T + params["wkv_b"]
    kv = kv.reshape(B, S, NUM_GROUPS, 2 * DEPTH)
    Kg, Vg = kv[..., :DEPTH], kv[..., DEPTH:]
    rep = NUM_HEADS // NUM_GROUPS
    Ke = jnp.broadcast_to(Kg[:, :, None],
                          (B, S, rep, NUM_GROUPS, DEPTH)).reshape(B, S, NUM_HEADS, DEPTH)
    Ve = jnp.broadcast_to(Vg[:, :, None],
                          (B, S, rep, NUM_GROUPS, DEPTH)).reshape(B, S, NUM_HEADS, DEPTH)
    Qh = qp.reshape(B, S, NUM_HEADS, DEPTH).transpose(0, 2, 1, 3)
    Kh = Ke.transpose(0, 2, 1, 3)
    Vh = Ve.transpose(0, 2, 1, 3)
    logits = jnp.einsum("bhqd,bhkd->bhqk", Qh, Kh) / jnp.sqrt(jnp.float32(DEPTH))
    w = jax.nn.softmax(logits, axis=-1)
    o = jnp.einsum("bhqk,bhkd->bhqd", w, Vh)
    o = o.transpose(0, 2, 1, 3).reshape(B, S, D)
    out = o @ params["wd_w"].T + params["wd_b"]
    return out, w


if __name__ == "__main__":
    batch_size, seq_len = 2, 10

    key = jax.random.PRNGKey(0)
    k_q, k_k, k_v, k_wq, k_bq, k_wkv, k_bkv, k_wd, k_bd = jax.random.split(key, 9)

    # Inputs (uniform [0,1), like torch.rand in the reference script).
    Q = jax.random.uniform(k_q, (batch_size, seq_len, D_MODEL), jnp.float32)
    K = jax.random.uniform(k_k, (batch_size, seq_len, D_MODEL), jnp.float32)
    V = jax.random.uniform(k_v, (batch_size, seq_len, D_MODEL), jnp.float32)

    # Deterministic synthetic parameters (nn.Linear weight shapes are [out, in]).
    def uinit(k, shape, fan_in):
        bound = 1.0 / jnp.sqrt(jnp.float32(fan_in))
        return jax.random.uniform(k, shape, jnp.float32, -bound, bound)

    params = {
        "wq_w": uinit(k_wq, (D_MODEL, D_MODEL), D_MODEL),
        "wq_b": uinit(k_bq, (D_MODEL,), D_MODEL),
        "wkv_w": uinit(k_wkv, (KV_DIM, D_MODEL), D_MODEL),
        "wkv_b": uinit(k_bkv, (KV_DIM,), D_MODEL),
        "wd_w": uinit(k_wd, (D_MODEL, D_MODEL), D_MODEL),
        "wd_b": uinit(k_bd, (D_MODEL,), D_MODEL),
    }

    out, attn = gqa_forward(Q, K, V, params)
    out = jax.block_until_ready(out)
    attn = jax.block_until_ready(attn)

    out_ref, attn_w_ref = gqa_reference(Q, K, V, params)
    assert out.shape == (batch_size, seq_len, D_MODEL)
    assert attn.shape == (batch_size, NUM_HEADS, seq_len, seq_len)
    assert jnp.allclose(out, out_ref, rtol=1e-4, atol=1e-4)
    assert jnp.allclose(attn, attn_w_ref, rtol=1e-4, atol=1e-4)

    print("KERNEL_OK")
</pallas_src>

<mosaic_0001>
module attributes {stable_mosaic.version = 11 : i64} {
  func.func @gqa_kernel(%arg0: i32, %arg1: i32, %arg2: memref<1x16x64xf32, #tpu.memory_space<vmem>>, %arg3: memref<1x10x64xf32, #tpu.memory_space<vmem>>, %arg4: memref<64x64xf32, #tpu.memory_space<vmem>>, %arg5: memref<1x64xf32, #tpu.memory_space<vmem>>, %arg6: memref<64x32xf32, #tpu.memory_space<vmem>>, %arg7: memref<1x32xf32, #tpu.memory_space<vmem>>, %arg8: memref<64x64xf32, #tpu.memory_space<vmem>>, %arg9: memref<1x64xf32, #tpu.memory_space<vmem>>, %arg10: memref<1x16x64xf32, #tpu.memory_space<vmem>>, %arg11: memref<1x8x16x128xf32, #tpu.memory_space<vmem>>, %arg12: memref<128x32xf32, #tpu.memory_space<vmem>>) attributes {dimension_semantics = [#tpu.dimension_semantics<parallel>, #tpu.dimension_semantics<parallel>], iteration_bounds = array<i64: 2, 1>, scalar_prefetch = 0 : i64, scratch_operands = 1 : i64, tpu.core_type = #tpu.core_type<tc>, window_params = [{transform_indices = @transform_0, window_bounds = array<i64: 1, 16, 64>}, {transform_indices = @transform_1, window_bounds = array<i64: 1, 10, 64>}, {pipeline_mode = #tpu.pipeline_mode<synchronous>, transform_indices = @transform_2, window_bounds = array<i64: 64, 64>}, {pipeline_mode = #tpu.pipeline_mode<synchronous>, transform_indices = @transform_3, window_bounds = array<i64: 1, 64>}, {pipeline_mode = #tpu.pipeline_mode<synchronous>, transform_indices = @transform_4, window_bounds = array<i64: 64, 32>}, {pipeline_mode = #tpu.pipeline_mode<synchronous>, transform_indices = @transform_5, window_bounds = array<i64: 1, 32>}, {pipeline_mode = #tpu.pipeline_mode<synchronous>, transform_indices = @transform_6, window_bounds = array<i64: 64, 64>}, {pipeline_mode = #tpu.pipeline_mode<synchronous>, transform_indices = @transform_7, window_bounds = array<i64: 1, 64>}, {transform_indices = @transform_8, window_bounds = array<i64: 1, 16, 64>}, {transform_indices = @transform_9, window_bounds = array<i64: 1, 8, 16, 128>}]} {
    %cst = arith.constant 8.000000e+00 : f32
    %0 = math.sqrt %cst : f32
    %cst_0 = arith.constant 1.000000e+00 : f32
    %1 = arith.divf %cst_0, %0 : f32
    %c0 = arith.constant 0 : index
    %c0_1 = arith.constant 0 : index
    %c0_2 = arith.constant 0 : index
    %2 = vector.load %arg2[%c0, %c0_1, %c0_2] : memref<1x16x64xf32, #tpu.memory_space<vmem>>, vector<1x16x64xf32>
    %3 = vector.shape_cast %2 : vector<1x16x64xf32> to vector<16x64xf32>
    %c0_3 = arith.constant 0 : index
    %c0_4 = arith.constant 0 : index
    %4 = vector.load %arg4[%c0_3, %c0_4] : memref<64x64xf32, #tpu.memory_space<vmem>>, vector<64x64xf32>
    %cst_5 = arith.constant dense<0.000000e+00> : vector<16x64xf32>
    %5 = tpu.matmul %3, %4, %cst_5 {dimension_numbers = #tpu.dot_dimension_numbers<[1], [0], [0], [1], [0, 0, 1, 1], [], []>} : vector<16x64xf32>, vector<64x64xf32>, vector<16x64xf32> -> vector<16x64xf32>
    %c0_6 = arith.constant 0 : index
    %c0_7 = arith.constant 0 : index
    %6 = vector.load %arg5[%c0_6, %c0_7] : memref<1x64xf32, #tpu.memory_space<vmem>>, vector<1x64xf32>
    %7 = vector.broadcast %6 : vector<1x64xf32> to vector<16x64xf32>
    %8 = arith.addf %5, %7 : vector<16x64xf32>
    %c0_8 = arith.constant 0 : index
    %c0_9 = arith.constant 0 : index
    %c0_10 = arith.constant 0 : index
    %9 = vector.load %arg3[%c0_8, %c0_9, %c0_10] : memref<1x10x64xf32, #tpu.memory_space<vmem>>, vector<1x10x64xf32>
    %10 = vector.shape_cast %9 : vector<1x10x64xf32> to vector<10x64xf32>
    %c0_11 = arith.constant 0 : index
    %c0_12 = arith.constant 0 : index
    %11 = vector.load %arg6[%c0_11, %c0_12] : memref<64x32xf32, #tpu.memory_space<vmem>>, vector<64x32xf32>
    %cst_13 = arith.constant dense<0.000000e+00> : vector<10x32xf32>
    %12 = tpu.matmul %10, %11, %cst_13 {dimension_numbers = #tpu.dot_dimension_numbers<[1], [0], [0], [1], [0, 0, 1, 1], [], []>} : vector<10x64xf32>, vector<64x32xf32>, vector<10x32xf32> -> vector<10x32xf32>
    %c0_14 = arith.constant 0 : index
    %c0_15 = arith.constant 0 : index
    %13 = vector.load %arg7[%c0_14, %c0_15] : memref<1x32xf32, #tpu.memory_space<vmem>>, vector<1x32xf32>
    %14 = vector.broadcast %13 : vector<1x32xf32> to vector<10x32xf32>
    %15 = arith.addf %12, %14 : vector<10x32xf32>
    %cst_16 = arith.constant 0.000000e+00 : f32
    %16 = vector.broadcast %cst_16 : f32 to vector<128x32xf32>
    %c0_17 = arith.constant 0 : index
    %c0_18 = arith.constant 0 : index
    %17 = vector.load %arg12[%c0_17, %c0_18] : memref<128x32xf32, #tpu.memory_space<vmem>>, vector<128x32xf32>
    tpu.vector_store %arg12[%c0_17, %c0_18], %16 {strides = array<i32>} : memref<128x32xf32, #tpu.memory_space<vmem>>, vector<128x32xf32>,
    %c0_19 = arith.constant 0 : index
    %c0_20 = arith.constant 0 : index
    %18 = vector.load %arg12[%c0_19, %c0_20] : memref<128x32xf32, #tpu.memory_space<vmem>>, vector<10x32xf32>
    tpu.vector_store %arg12[%c0_19, %c0_20], %15 {strides = array<i32>} : memref<128x32xf32, #tpu.memory_space<vmem>>, vector<10x32xf32>,
    %c0_21 = arith.constant 0 : index
    %c0_22 = arith.constant 0 : index
    %19 = vector.load %arg12[%c0_21, %c0_22] : memref<128x32xf32, #tpu.memory_space<vmem>>, vector<128x32xf32>
    %20 = tpu.iota {dimensions = array<i32: 1>} : vector<16x128xi32>
    %c10_i32 = arith.constant 10 : i32
    %21 = vector.broadcast %c10_i32 : i32 to vector<16x128xi32>
    %22 = arith.cmpi slt, %20, %21 : vector<16x128xi32>
    %c0_23 = arith.constant 0 : index
    %c0_24 = arith.constant 0 : index
    %23 = vector.load %arg8[%c0_23, %c0_24] : memref<64x64xf32, #tpu.memory_space<vmem>>, vector<64x64xf32>
    %cst_25 = arith.constant 0.000000e+00 : f32
    %24 = vector.broadcast %cst_25 : f32 to vector<16x64xf32>
    %25 = vector.extract_strided_slice %19 {offsets = [0, 0], sizes = [128, 8], strides = [1, 1]} : vector<128x32xf32> to vector<128x8xf32>
    %26 = vector.extract_strided_slice %19 {offsets = [0, 8], sizes = [128, 8], strides = [1, 1]} : vector<128x32xf32> to vector<128x8xf32>
    %27 = vector.extract_strided_slice %8 {offsets = [0, 0], sizes = [16, 8], strides = [1, 1]} : vector<16x64xf32> to vector<16x8xf32>
    %cst_26 = arith.constant dense<0.000000e+00> : vector<16x128xf32>
    %28 = tpu.matmul %27, %25, %cst_26 {dimension_numbers = #tpu.dot_dimension_numbers<[1], [1], [0], [0], [0, 0, 1, 0], [], []>} : vector<16x8xf32>, vector<128x8xf32>, vector<16x128xf32> -> vector<16x128xf32>
    %29 = vector.broadcast %1 : f32 to vector<16x128xf32>
    %30 = arith.mulf %28, %29 : vector<16x128xf32>
    %cst_27 = arith.constant -1.000000e+30 : f32
    %31 = vector.broadcast %cst_27 : f32 to vector<16x128xf32>
    %32 = arith.select %22, %30, %31 : vector<16x128xi1>, vector<16x128xf32>
    %cst_28 = arith.constant dense<0xFF800000> : vector<16xf32>
    %33 = vector.multi_reduction <maximumf>, %32, %cst_28 [1] : vector<16x128xf32> to vector<16xf32>
    %34 = vector.shape_cast %33 : vector<16xf32> to vector<16x1xf32>
    %35 = vector.broadcast %34 : vector<16x1xf32> to vector<16x128xf32>
    %36 = arith.subf %32, %35 : vector<16x128xf32>
    %37 = math.exp %36 : vector<16x128xf32>
    %cst_29 = arith.constant dense<0.000000e+00> : vector<16xf32>
    %38 = vector.multi_reduction <add>, %37, %cst_29 [1] : vector<16x128xf32> to vector<16xf32>
    %39 = vector.shape_cast %38 : vector<16xf32> to vector<16x1xf32>
    %40 = tpu.reciprocal %39 : vector<16x1xf32> -> vector<16x1xf32>
    %41 = vector.broadcast %40 : vector<16x1xf32> to vector<16x128xf32>
    %42 = arith.mulf %37, %41 : vector<16x128xf32>
    %c0_30 = arith.constant 0 : index
    %c0_31 = arith.constant 0 : index
    %c0_32 = arith.constant 0 : index
    %c0_33 = arith.constant 0 : index
    %43 = vector.load %arg11[%c0_30, %c0_31, %c0_32, %c0_33] : memref<1x8x16x128xf32, #tpu.memory_space<vmem>>, vector<1x1x16x128xf32>
    %44 = vector.shape_cast %43 : vector<1x1x16x128xf32> to vector<16x128xf32>
    %45 = vector.shape_cast %42 : vector<16x128xf32> to vector<1x1x16x128xf32>
    tpu.vector_store %arg11[%c0_30, %c0_31, %c0_32, %c0_33], %45 {strides = array<i32>} : memref<1x8x16x128xf32, #tpu.memory_space<vmem>>, vector<1x1x16x128xf32>,
    %cst_34 = arith.constant dense<0.000000e+00> : vector<16x8xf32>
    %46 = tpu.matmul %42, %26, %cst_34 {dimension_numbers = #tpu.dot_dimension_numbers<[1], [0], [0], [1], [0, 0, 1, 1], [], []>} : vector<16x128xf32>, vector<128x8xf32>, vector<16x8xf32> -> vector<16x8xf32>
    %47 = vector.extract_strided_slice %23 {offsets = [0, 0], sizes = [8, 64], strides = [1, 1]} : vector<64x64xf32> to vector<8x64xf32>
    %cst_35 = arith.constant dense<0.000000e+00> : vector<16x64xf32>
    %48 = tpu.matmul %46, %47, %cst_35 {dimension_numbers = #tpu.dot_dimension_numbers<[1], [0], [0], [1], [0, 0, 1, 1], [], []>} : vector<16x8xf32>, vector<8x64xf32>, vector<16x64xf32> -> vector<16x64xf32>
    %49 = arith.addf %24, %48 : vector<16x64xf32>
    %50 = vector.extract_strided_slice %8 {offsets = [0, 16], sizes = [16, 8], strides = [1, 1]} : vector<16x64xf32> to vector<16x8xf32>
    %cst_36 = arith.constant dense<0.000000e+00> : vector<16x128xf32>
    %51 = tpu.matmul %50, %25, %cst_36 {dimension_numbers = #tpu.dot_dimension_numbers<[1], [1], [0], [0], [0, 0, 1, 0], [], []>} : vector<16x8xf32>, vector<128x8xf32>, vector<16x128xf32> -> vector<16x128xf32>
    %52 = vector.broadcast %1 : f32 to vector<16x128xf32>
    %53 = arith.mulf %51, %52 : vector<16x128xf32>
    %cst_37 = arith.constant -1.000000e+30 : f32
    %54 = vector.broadcast %cst_37 : f32 to vector<16x128xf32>
    %55 = arith.select %22, %53, %54 : vector<16x128xi1>, vector<16x128xf32>
    %cst_38 = arith.constant dense<0xFF800000> : vector<16xf32>
    %56 = vector.multi_reduction <maximumf>, %55, %cst_38 [1] : vector<16x128xf32> to vector<16xf32>
    %57 = vector.shape_cast %56 : vector<16xf32> to vector<16x1xf32>
    %58 = vector.broadcast %57 : vector<16x1xf32> to vector<16x128xf32>
    %59 = arith.subf %55, %58 : vector<16x128xf32>
    %60 = math.exp %59 : vector<16x128xf32>
    %cst_39 = arith.constant dense<0.000000e+00> : vector<16xf32>
    %61 = vector.multi_reduction <add>, %60, %cst_39 [1] : vector<16x128xf32> to vector<16xf32>
    %62 = vector.shape_cast %61 : vector<16xf32> to vector<16x1xf32>
    %63 = tpu.reciprocal %62 : vector<16x1xf32> -> vector<16x1xf32>
    %64 = vector.broadcast %63 : vector<16x1xf32> to vector<16x128xf32>
    %65 = arith.mulf %60, %64 : vector<16x128xf32>
    %c0_40 = arith.constant 0 : index
    %c2 = arith.constant 2 : index
    %c0_41 = arith.constant 0 : index
    %c0_42 = arith.constant 0 : index
    %66 = vector.load %arg11[%c0_40, %c2, %c0_41, %c0_42] : memref<1x8x16x128xf32, #tpu.memory_space<vmem>>, vector<1x1x16x128xf32>
    %67 = vector.shape_cast %66 : vector<1x1x16x128xf32> to vector<16x128xf32>
    %68 = vector.shape_cast %65 : vector<16x128xf32> to vector<1x1x16x128xf32>
    tpu.vector_store %arg11[%c0_40, %c2, %c0_41, %c0_42], %68 {strides = array<i32>} : memref<1x8x16x128xf32, #tpu.memory_space<vmem>>, vector<1x1x16x128xf32>,
    %cst_43 = arith.constant dense<0.000000e+00> : vector<16x8xf32>
    %69 = tpu.matmul %65, %26, %cst_43 {dimension_numbers = #tpu.dot_dimension_numbers<[1], [0], [0], [1], [0, 0, 1, 1], [], []>} : vector<16x128xf32>, vector<128x8xf32>, vector<16x8xf32> -> vector<16x8xf32>
    %70 = vector.extract_strided_slice %23 {offsets = [16, 0], sizes = [8, 64], strides = [1, 1]} : vector<64x64xf32> to vector<8x64xf32>
    %cst_44 = arith.constant dense<0.000000e+00> : vector<16x64xf32>
    %71 = tpu.matmul %69, %70, %cst_44 {dimension_numbers = #tpu.dot_dimension_numbers<[1], [0], [0], [1], [0, 0, 1, 1], [], []>} : vector<16x8xf32>, vector<8x64xf32>, vector<16x64xf32> -> vector<16x64xf32>
    %72 = arith.addf %49, %71 : vector<16x64xf32>
    %73 = vector.extract_strided_slice %8 {offsets = [0, 32], sizes = [16, 8], strides = [1, 1]} : vector<16x64xf32> to vector<16x8xf32>
    %cst_45 = arith.constant dense<0.000000e+00> : vector<16x128xf32>
    %74 = tpu.matmul %73, %25, %cst_45 {dimension_numbers = #tpu.dot_dimension_numbers<[1], [1], [0], [0], [0, 0, 1, 0], [], []>} : vector<16x8xf32>, vector<128x8xf32>, vector<16x128xf32> -> vector<16x128xf32>
    %75 = vector.broadcast %1 : f32 to vector<16x128xf32>
    %76 = arith.mulf %74, %75 : vector<16x128xf32>
    %cst_46 = arith.constant -1.000000e+30 : f32
    %77 = vector.broadcast %cst_46 : f32 to vector<16x128xf32>
    %78 = arith.select %22, %76, %77 : vector<16x128xi1>, vector<16x128xf32>
    %cst_47 = arith.constant dense<0xFF800000> : vector<16xf32>
    %79 = vector.multi_reduction <maximumf>, %78, %cst_47 [1] : vector<16x128xf32> to vector<16xf32>
    %80 = vector.shape_cast %79 : vector<16xf32> to vector<16x1xf32>
    %81 = vector.broadcast %80 : vector<16x1xf32> to vector<16x128xf32>
    %82 = arith.subf %78, %81 : vector<16x128xf32>
    %83 = math.exp %82 : vector<16x128xf32>
    %cst_48 = arith.constant dense<0.000000e+00> : vector<16xf32>
    %84 = vector.multi_reduction <add>, %83, %cst_48 [1] : vector<16x128xf32> to vector<16xf32>
    %85 = vector.shape_cast %84 : vector<16xf32> to vector<16x1xf32>
    %86 = tpu.reciprocal %85 : vector<16x1xf32> -> vector<16x1xf32>
    %87 = vector.broadcast %86 : vector<16x1xf32> to vector<16x128xf32>
    %88 = arith.mulf %83, %87 : vector<16x128xf32>
    %c0_49 = arith.constant 0 : index
    %c4 = arith.constant 4 : index
    %c0_50 = arith.constant 0 : index
    %c0_51 = arith.constant 0 : index
    %89 = vector.load %arg11[%c0_49, %c4, %c0_50, %c0_51] : memref<1x8x16x128xf32, #tpu.memory_space<vmem>>, vector<1x1x16x128xf32>
    %90 = vector.shape_cast %89 : vector<1x1x16x128xf32> to vector<16x128xf32>
    %91 = vector.shape_cast %88 : vector<16x128xf32> to vector<1x1x16x128xf32>
    tpu.vector_store %arg11[%c0_49, %c4, %c0_50, %c0_51], %91 {strides = array<i32>} : memref<1x8x16x128xf32, #tpu.memory_space<vmem>>, vector<1x1x16x128xf32>,
    %cst_52 = arith.constant dense<0.000000e+00> : vector<16x8xf32>
    %92 = tpu.matmul %88, %26, %cst_52 {dimension_numbers = #tpu.dot_dimension_numbers<[1], [0], [0], [1], [0, 0, 1, 1], [], []>} : vector<16x128xf32>, vector<128x8xf32>, vector<16x8xf32> -> vector<16x8xf32>
    %93 = vector.extract_strided_slice %23 {offsets = [32, 0], sizes = [8, 64], strides = [1, 1]} : vector<64x64xf32> to vector<8x64xf32>
    %cst_53 = arith.constant dense<0.000000e+00> : vector<16x64xf32>
    %94 = tpu.matmul %92, %93, %cst_53 {dimension_numbers = #tpu.dot_dimension_numbers<[1], [0], [0], [1], [0, 0, 1, 1], [], []>} : vector<16x8xf32>, vector<8x64xf32>, vector<16x64xf32> -> vector<16x64xf32>
    %95 = arith.addf %72, %94 : vector<16x64xf32>
    %96 = vector.extract_strided_slice %8 {offsets = [0, 48], sizes = [16, 8], strides = [1, 1]} : vector<16x64xf32> to vector<16x8xf32>
    %cst_54 = arith.constant dense<0.000000e+00> : vector<16x128xf32>
    %97 = tpu.matmul %96, %25, %cst_54 {dimension_numbers = #tpu.dot_dimension_numbers<[1], [1], [0], [0], [0, 0, 1, 0], [], []>} : vector<16x8xf32>, vector<128x8xf32>, vector<16x128xf32> -> vector<16x128xf32>
    %98 = vector.broadcast %1 : f32 to vector<16x128xf32>
    %99 = arith.mulf %97, %98 : vector<16x128xf32>
    %cst_55 = arith.constant -1.000000e+30 : f32
    %100 = vector.broadcast %cst_55 : f32 to vector<16x128xf32>
    %101 = arith.select %22, %99, %100 : vector<16x128xi1>, vector<16x128xf32>
    %cst_56 = arith.constant dense<0xFF800000> : vector<16xf32>
    %102 = vector.multi_reduction <maximumf>, %101, %cst_56 [1] : vector<16x128xf32> to vector<16xf32>
    %103 = vector.shape_cast %102 : vector<16xf32> to vector<16x1xf32>
    %104 = vector.broadcast %103 : vector<16x1xf32> to vector<16x128xf32>
    %105 = arith.subf %101, %104 : vector<16x128xf32>
    %106 = math.exp %105 : vector<16x128xf32>
    %cst_57 = arith.constant dense<0.000000e+00> : vector<16xf32>
    %107 = vector.multi_reduction <add>, %106, %cst_57 [1] : vector<16x128xf32> to vector<16xf32>
    %108 = vector.shape_cast %107 : vector<16xf32> to vector<16x1xf32>
    %109 = tpu.reciprocal %108 : vector<16x1xf32> -> vector<16x1xf32>
    %110 = vector.broadcast %109 : vector<16x1xf32> to vector<16x128xf32>
    %111 = arith.mulf %106, %110 : vector<16x128xf32>
    %c0_58 = arith.constant 0 : index
    %c6 = arith.constant 6 : index
    %c0_59 = arith.constant 0 : index
    %c0_60 = arith.constant 0 : index
    %112 = vector.load %arg11[%c0_58, %c6, %c0_59, %c0_60] : memref<1x8x16x128xf32, #tpu.memory_space<vmem>>, vector<1x1x16x128xf32>
    %113 = vector.shape_cast %112 : vector<1x1x16x128xf32> to vector<16x128xf32>
    %114 = vector.shape_cast %111 : vector<16x128xf32> to vector<1x1x16x128xf32>
    tpu.vector_store %arg11[%c0_58, %c6, %c0_59, %c0_60], %114 {strides = array<i32>} : memref<1x8x16x128xf32, #tpu.memory_space<vmem>>, vector<1x1x16x128xf32>,
    %cst_61 = arith.constant dense<0.000000e+00> : vector<16x8xf32>
    %115 = tpu.matmul %111, %26, %cst_61 {dimension_numbers = #tpu.dot_dimension_numbers<[1], [0], [0], [1], [0, 0, 1, 1], [], []>} : vector<16x128xf32>, vector<128x8xf32>, vector<16x8xf32> -> vector<16x8xf32>
    %116 = vector.extract_strided_slice %23 {offsets = [48, 0], sizes = [8, 64], strides = [1, 1]} : vector<64x64xf32> to vector<8x64xf32>
    %cst_62 = arith.constant dense<0.000000e+00> : vector<16x64xf32>
    %117 = tpu.matmul %115, %116, %cst_62 {dimension_numbers = #tpu.dot_dimension_numbers<[1], [0], [0], [1], [0, 0, 1, 1], [], []>} : vector<16x8xf32>, vector<8x64xf32>, vector<16x64xf32> -> vector<16x64xf32>
    %118 = arith.addf %95, %117 : vector<16x64xf32>
    %119 = vector.extract_strided_slice %19 {offsets = [0, 16], sizes = [128, 8], strides = [1, 1]} : vector<128x32xf32> to vector<128x8xf32>
    %120 = vector.extract_strided_slice %19 {offsets = [0, 24], sizes = [128, 8], strides = [1, 1]} : vector<128x32xf32> to vector<128x8xf32>
    %121 = vector.extract_strided_slice %8 {offsets = [0, 8], sizes = [16, 8], strides = [1, 1]} : vector<16x64xf32> to vector<16x8xf32>
    %cst_63 = arith.constant dense<0.000000e+00> : vector<16x128xf32>
    %122 = tpu.matmul %121, %119, %cst_63 {dimension_numbers = #tpu.dot_dimension_numbers<[1], [1], [0], [0], [0, 0, 1, 0], [], []>} : vector<16x8xf32>, vector<128x8xf32>, vector<16x128xf32> -> vector<16x128xf32>
    %123 = vector.broadcast %1 : f32 to vector<16x128xf32>
    %124 = arith.mulf %122, %123 : vector<16x128xf32>
    %cst_64 = arith.constant -1.000000e+30 : f32
    %125 = vector.broadcast %cst_64 : f32 to vector<16x128xf32>
    %126 = arith.select %22, %124, %125 : vector<16x128xi1>, vector<16x128xf32>
    %cst_65 = arith.constant dense<0xFF800000> : vector<16xf32>
    %127 = vector.multi_reduction <maximumf>, %126, %cst_65 [1] : vector<16x128xf32> to vector<16xf32>
    %128 = vector.shape_cast %127 : vector<16xf32> to vector<16x1xf32>
    %129 = vector.broadcast %128 : vector<16x1xf32> to vector<16x128xf32>
    %130 = arith.subf %126, %129 : vector<16x128xf32>
    %131 = math.exp %130 : vector<16x128xf32>
    %cst_66 = arith.constant dense<0.000000e+00> : vector<16xf32>
    %132 = vector.multi_reduction <add>, %131, %cst_66 [1] : vector<16x128xf32> to vector<16xf32>
    %133 = vector.shape_cast %132 : vector<16xf32> to vector<16x1xf32>
    %134 = tpu.reciprocal %133 : vector<16x1xf32> -> vector<16x1xf32>
    %135 = vector.broadcast %134 : vector<16x1xf32> to vector<16x128xf32>
    %136 = arith.mulf %131, %135 : vector<16x128xf32>
    %c0_67 = arith.constant 0 : index
    %c1 = arith.constant 1 : index
    %c0_68 = arith.constant 0 : index
    %c0_69 = arith.constant 0 : index
    %137 = vector.load %arg11[%c0_67, %c1, %c0_68, %c0_69] : memref<1x8x16x128xf32, #tpu.memory_space<vmem>>, vector<1x1x16x128xf32>
    %138 = vector.shape_cast %137 : vector<1x1x16x128xf32> to vector<16x128xf32>
    %139 = vector.shape_cast %136 : vector<16x128xf32> to vector<1x1x16x128xf32>
    tpu.vector_store %arg11[%c0_67, %c1, %c0_68, %c0_69], %139 {strides = array<i32>} : memref<1x8x16x128xf32, #tpu.memory_space<vmem>>, vector<1x1x16x128xf32>,
    %cst_70 = arith.constant dense<0.000000e+00> : vector<16x8xf32>
    %140 = tpu.matmul %136, %120, %cst_70 {dimension_numbers = #tpu.dot_dimension_numbers<[1], [0], [0], [1], [0, 0, 1, 1], [], []>} : vector<16x128xf32>, vector<128x8xf32>, vector<16x8xf32> -> vector<16x8xf32>
    %141 = vector.extract_strided_slice %23 {offsets = [8, 0], sizes = [8, 64], strides = [1, 1]} : vector<64x64xf32> to vector<8x64xf32>
    %cst_71 = arith.constant dense<0.000000e+00> : vector<16x64xf32>
    %142 = tpu.matmul %140, %141, %cst_71 {dimension_numbers = #tpu.dot_dimension_numbers<[1], [0], [0], [1], [0, 0, 1, 1], [], []>} : vector<16x8xf32>, vector<8x64xf32>, vector<16x64xf32> -> vector<16x64xf32>
    %143 = arith.addf %118, %142 : vector<16x64xf32>
    %144 = vector.extract_strided_slice %8 {offsets = [0, 24], sizes = [16, 8], strides = [1, 1]} : vector<16x64xf32> to vector<16x8xf32>
    %cst_72 = arith.constant dense<0.000000e+00> : vector<16x128xf32>
    %145 = tpu.matmul %144, %119, %cst_72 {dimension_numbers = #tpu.dot_dimension_numbers<[1], [1], [0], [0], [0, 0, 1, 0], [], []>} : vector<16x8xf32>, vector<128x8xf32>, vector<16x128xf32> -> vector<16x128xf32>
    %146 = vector.broadcast %1 : f32 to vector<16x128xf32>
    %147 = arith.mulf %145, %146 : vector<16x128xf32>
    %cst_73 = arith.constant -1.000000e+30 : f32
    %148 = vector.broadcast %cst_73 : f32 to vector<16x128xf32>
    %149 = arith.select %22, %147, %148 : vector<16x128xi1>, vector<16x128xf32>
    %cst_74 = arith.constant dense<0xFF800000> : vector<16xf32>
    %150 = vector.multi_reduction <maximumf>, %149, %cst_74 [1] : vector<16x128xf32> to vector<16xf32>
    %151 = vector.shape_cast %150 : vector<16xf32> to vector<16x1xf32>
    %152 = vector.broadcast %151 : vector<16x1xf32> to vector<16x128xf32>
    %153 = arith.subf %149, %152 : vector<16x128xf32>
    %154 = math.exp %153 : vector<16x128xf32>
    %cst_75 = arith.constant dense<0.000000e+00> : vector<16xf32>
    %155 = vector.multi_reduction <add>, %154, %cst_75 [1] : vector<16x128xf32> to vector<16xf32>
    %156 = vector.shape_cast %155 : vector<16xf32> to vector<16x1xf32>
    %157 = tpu.reciprocal %156 : vector<16x1xf32> -> vector<16x1xf32>
    %158 = vector.broadcast %157 : vector<16x1xf32> to vector<16x128xf32>
    %159 = arith.mulf %154, %158 : vector<16x128xf32>
    %c0_76 = arith.constant 0 : index
    %c3 = arith.constant 3 : index
    %c0_77 = arith.constant 0 : index
    %c0_78 = arith.constant 0 : index
    %160 = vector.load %arg11[%c0_76, %c3, %c0_77, %c0_78] : memref<1x8x16x128xf32, #tpu.memory_space<vmem>>, vector<1x1x16x128xf32>
    %161 = vector.shape_cast %160 : vector<1x1x16x128xf32> to vector<16x128xf32>
    %162 = vector.shape_cast %159 : vector<16x128xf32> to vector<1x1x16x128xf32>
    tpu.vector_store %arg11[%c0_76, %c3, %c0_77, %c0_78], %162 {strides = array<i32>} : memref<1x8x16x128xf32, #tpu.memory_space<vmem>>, vector<1x1x16x128xf32>,
    %cst_79 = arith.constant dense<0.000000e+00> : vector<16x8xf32>
    %163 = tpu.matmul %159, %120, %cst_79 {dimension_numbers = #tpu.dot_dimension_numbers<[1], [0], [0], [1], [0, 0, 1, 1], [], []>} : vector<16x128xf32>, vector<128x8xf32>, vector<16x8xf32> -> vector<16x8xf32>
    %164 = vector.extract_strided_slice %23 {offsets = [24, 0], sizes = [8, 64], strides = [1, 1]} : vector<64x64xf32> to vector<8x64xf32>
    %cst_80 = arith.constant dense<0.000000e+00> : vector<16x64xf32>
    %165 = tpu.matmul %163, %164, %cst_80 {dimension_numbers = #tpu.dot_dimension_numbers<[1], [0], [0], [1], [0, 0, 1, 1], [], []>} : vector<16x8xf32>, vector<8x64xf32>, vector<16x64xf32> -> vector<16x64xf32>
    %166 = arith.addf %143, %165 : vector<16x64xf32>
    %167 = vector.extract_strided_slice %8 {offsets = [0, 40], sizes = [16, 8], strides = [1, 1]} : vector<16x64xf32> to vector<16x8xf32>
    %cst_81 = arith.constant dense<0.000000e+00> : vector<16x128xf32>
    %168 = tpu.matmul %167, %119, %cst_81 {dimension_numbers = #tpu.dot_dimension_numbers<[1], [1], [0], [0], [0, 0, 1, 0], [], []>} : vector<16x8xf32>, vector<128x8xf32>, vector<16x128xf32> -> vector<16x128xf32>
    %169 = vector.broadcast %1 : f32 to vector<16x128xf32>
    %170 = arith.mulf %168, %169 : vector<16x128xf32>
    %cst_82 = arith.constant -1.000000e+30 : f32
    %171 = vector.broadcast %cst_82 : f32 to vector<16x128xf32>
    %172 = arith.select %22, %170, %171 : vector<16x128xi1>, vector<16x128xf32>
    %cst_83 = arith.constant dense<0xFF800000> : vector<16xf32>
    %173 = vector.multi_reduction <maximumf>, %172, %cst_83 [1] : vector<16x128xf32> to vector<16xf32>
    %174 = vector.shape_cast %173 : vector<16xf32> to vector<16x1xf32>
    %175 = vector.broadcast %174 : vector<16x1xf32> to vector<16x128xf32>
    %176 = arith.subf %172, %175 : vector<16x128xf32>
    %177 = math.exp %176 : vector<16x128xf32>
    %cst_84 = arith.constant dense<0.000000e+00> : vector<16xf32>
    %178 = vector.multi_reduction <add>, %177, %cst_84 [1] : vector<16x128xf32> to vector<16xf32>
    %179 = vector.shape_cast %178 : vector<16xf32> to vector<16x1xf32>
    %180 = tpu.reciprocal %179 : vector<16x1xf32> -> vector<16x1xf32>
    %181 = vector.broadcast %180 : vector<16x1xf32> to vector<16x128xf32>
    %182 = arith.mulf %177, %181 : vector<16x128xf32>
    %c0_85 = arith.constant 0 : index
    %c5 = arith.constant 5 : index
    %c0_86 = arith.constant 0 : index
    %c0_87 = arith.constant 0 : index
    %183 = vector.load %arg11[%c0_85, %c5, %c0_86, %c0_87] : memref<1x8x16x128xf32, #tpu.memory_space<vmem>>, vector<1x1x16x128xf32>
    %184 = vector.shape_cast %183 : vector<1x1x16x128xf32> to vector<16x128xf32>
    %185 = vector.shape_cast %182 : vector<16x128xf32> to vector<1x1x16x128xf32>
    tpu.vector_store %arg11[%c0_85, %c5, %c0_86, %c0_87], %185 {strides = array<i32>} : memref<1x8x16x128xf32, #tpu.memory_space<vmem>>, vector<1x1x16x128xf32>,
    %cst_88 = arith.constant dense<0.000000e+00> : vector<16x8xf32>
    %186 = tpu.matmul %182, %120, %cst_88 {dimension_numbers = #tpu.dot_dimension_numbers<[1], [0], [0], [1], [0, 0, 1, 1], [], []>} : vector<16x128xf32>, vector<128x8xf32>, vector<16x8xf32> -> vector<16x8xf32>
    %187 = vector.extract_strided_slice %23 {offsets = [40, 0], sizes = [8, 64], strides = [1, 1]} : vector<64x64xf32> to vector<8x64xf32>
    %cst_89 = arith.constant dense<0.000000e+00> : vector<16x64xf32>
    %188 = tpu.matmul %186, %187, %cst_89 {dimension_numbers = #tpu.dot_dimension_numbers<[1], [0], [0], [1], [0, 0, 1, 1], [], []>} : vector<16x8xf32>, vector<8x64xf32>, vector<16x64xf32> -> vector<16x64xf32>
    %189 = arith.addf %166, %188 : vector<16x64xf32>
    %190 = vector.extract_strided_slice %8 {offsets = [0, 56], sizes = [16, 8], strides = [1, 1]} : vector<16x64xf32> to vector<16x8xf32>
    %cst_90 = arith.constant dense<0.000000e+00> : vector<16x128xf32>
    %191 = tpu.matmul %190, %119, %cst_90 {dimension_numbers = #tpu.dot_dimension_numbers<[1], [1], [0], [0], [0, 0, 1, 0], [], []>} : vector<16x8xf32>, vector<128x8xf32>, vector<16x128xf32> -> vector<16x128xf32>
    %192 = vector.broadcast %1 : f32 to vector<16x128xf32>
    %193 = arith.mulf %191, %192 : vector<16x128xf32>
    %cst_91 = arith.constant -1.000000e+30 : f32
    %194 = vector.broadcast %cst_91 : f32 to vector<16x128xf32>
    %195 = arith.select %22, %193, %194 : vector<16x128xi1>, vector<16x128xf32>
    %cst_92 = arith.constant dense<0xFF800000> : vector<16xf32>
    %196 = vector.multi_reduction <maximumf>, %195, %cst_92 [1] : vector<16x128xf32> to vector<16xf32>
    %197 = vector.shape_cast %196 : vector<16xf32> to vector<16x1xf32>
    %198 = vector.broadcast %197 : vector<16x1xf32> to vector<16x128xf32>
    %199 = arith.subf %195, %198 : vector<16x128xf32>
    %200 = math.exp %199 : vector<16x128xf32>
    %cst_93 = arith.constant dense<0.000000e+00> : vector<16xf32>
    %201 = vector.multi_reduction <add>, %200, %cst_93 [1] : vector<16x128xf32> to vector<16xf32>
    %202 = vector.shape_cast %201 : vector<16xf32> to vector<16x1xf32>
    %203 = tpu.reciprocal %202 : vector<16x1xf32> -> vector<16x1xf32>
    %204 = vector.broadcast %203 : vector<16x1xf32> to vector<16x128xf32>
    %205 = arith.mulf %200, %204 : vector<16x128xf32>
    %c0_94 = arith.constant 0 : index
    %c7 = arith.constant 7 : index
    %c0_95 = arith.constant 0 : index
    %c0_96 = arith.constant 0 : index
    %206 = vector.load %arg11[%c0_94, %c7, %c0_95, %c0_96] : memref<1x8x16x128xf32, #tpu.memory_space<vmem>>, vector<1x1x16x128xf32>
    %207 = vector.shape_cast %206 : vector<1x1x16x128xf32> to vector<16x128xf32>
    %208 = vector.shape_cast %205 : vector<16x128xf32> to vector<1x1x16x128xf32>
    tpu.vector_store %arg11[%c0_94, %c7, %c0_95, %c0_96], %208 {strides = array<i32>} : memref<1x8x16x128xf32, #tpu.memory_space<vmem>>, vector<1x1x16x128xf32>,
    %cst_97 = arith.constant dense<0.000000e+00> : vector<16x8xf32>
    %209 = tpu.matmul %205, %120, %cst_97 {dimension_numbers = #tpu.dot_dimension_numbers<[1], [0], [0], [1], [0, 0, 1, 1], [], []>} : vector<16x128xf32>, vector<128x8xf32>, vector<16x8xf32> -> vector<16x8xf32>
    %210 = vector.extract_strided_slice %23 {offsets = [56, 0], sizes = [8, 64], strides = [1, 1]} : vector<64x64xf32> to vector<8x64xf32>
    %cst_98 = arith.constant dense<0.000000e+00> : vector<16x64xf32>
    %211 = tpu.matmul %209, %210, %cst_98 {dimension_numbers = #tpu.dot_dimension_numbers<[1], [0], [0], [1], [0, 0, 1, 1], [], []>} : vector<16x8xf32>, vector<8x64xf32>, vector<16x64xf32> -> vector<16x64xf32>
    %212 = arith.addf %189, %211 : vector<16x64xf32>
    %c0_99 = arith.constant 0 : index
    %c0_100 = arith.constant 0 : index
    %213 = vector.load %arg9[%c0_99, %c0_100] : memref<1x64xf32, #tpu.memory_space<vmem>>, vector<1x64xf32>
    %214 = vector.broadcast %213 : vector<1x64xf32> to vector<16x64xf32>
    %215 = arith.addf %212, %214 : vector<16x64xf32>
    %c0_101 = arith.constant 0 : index
    %c0_102 = arith.constant 0 : index
    %c0_103 = arith.constant 0 : index
    %216 = vector.load %arg10[%c0_101, %c0_102, %c0_103] : memref<1x16x64xf32, #tpu.memory_space<vmem>>, vector<1x16x64xf32>
    %217 = vector.shape_cast %216 : vector<1x16x64xf32> to vector<16x64xf32>
    %218 = vector.shape_cast %215 : vector<16x64xf32> to vector<1x16x64xf32>
    tpu.vector_store %arg10[%c0_101, %c0_102, %c0_103], %218 {strides = array<i32>} : memref<1x16x64xf32, #tpu.memory_space<vmem>>, vector<1x16x64xf32>,
    return
  }
  func.func @transform_0(%arg0: i32, %arg1: i32) -> (i32, i32, i32) {
    %c0_i32 = arith.constant 0 : i32
    %c0_i32_0 = arith.constant 0 : i32
    return %arg0, %arg1, %c0_i32 : i32, i32, i32
  }
  func.func @transform_1(%arg0: i32, %arg1: i32) -> (i32, i32, i32) {
    %c0_i32 = arith.constant 0 : i32
    %c0_i32_0 = arith.constant 0 : i32
    %c0_i32_1 = arith.constant 0 : i32
    return %arg0, %c0_i32, %c0_i32_0 : i32, i32, i32
  }
  func.func @transform_2(%arg0: i32, %arg1: i32) -> (i32, i32) {
    %c0_i32 = arith.constant 0 : i32
    %c0_i32_0 = arith.constant 0 : i32
    %c0_i32_1 = arith.constant 0 : i32
    return %c0_i32, %c0_i32_0 : i32, i32
  }
  func.func @transform_3(%arg0: i32, %arg1: i32) -> (i32, i32) {
    %c0_i32 = arith.constant 0 : i32
    %c0_i32_0 = arith.constant 0 : i32
    %c0_i32_1 = arith.constant 0 : i32
    return %c0_i32, %c0_i32_0 : i32, i32
  }
  func.func @transform_4(%arg0: i32, %arg1: i32) -> (i32, i32) {
    %c0_i32 = arith.constant 0 : i32
    %c0_i32_0 = arith.constant 0 : i32
    %c0_i32_1 = arith.constant 0 : i32
    return %c0_i32, %c0_i32_0 : i32, i32
  }
  func.func @transform_5(%arg0: i32, %arg1: i32) -> (i32, i32) {
    %c0_i32 = arith.constant 0 : i32
    %c0_i32_0 = arith.constant 0 : i32
    %c0_i32_1 = arith.constant 0 : i32
    return %c0_i32, %c0_i32_0 : i32, i32
  }
  func.func @transform_6(%arg0: i32, %arg1: i32) -> (i32, i32) {
    %c0_i32 = arith.constant 0 : i32
    %c0_i32_0 = arith.constant 0 : i32
    %c0_i32_1 = arith.constant 0 : i32
    return %c0_i32, %c0_i32_0 : i32, i32
  }
  func.func @transform_7(%arg0: i32, %arg1: i32) -> (i32, i32) {
    %c0_i32 = arith.constant 0 : i32
    %c0_i32_0 = arith.constant 0 : i32
    %c0_i32_1 = arith.constant 0 : i32
    return %c0_i32, %c0_i32_0 : i32, i32
  }
  func.func @transform_8(%arg0: i32, %arg1: i32) -> (i32, i32, i32) {
    %c0_i32 = arith.constant 0 : i32
    %c0_i32_0 = arith.constant 0 : i32
    return %arg0, %arg1, %c0_i32 : i32, i32, i32
  }
  func.func @transform_9(%arg0: i32, %arg1: i32) -> (i32, i32, i32, i32) {
    %c0_i32 = arith.constant 0 : i32
    %c0_i32_0 = arith.constant 0 : i32
    %c0_i32_1 = arith.constant 0 : i32
    return %arg0, %c0_i32, %arg1, %c0_i32_0 : i32, i32, i32, i32
  }
}

</mosaic_0001>

<bundles_post_ra>
// kernel: tpu_custom_call.1
= control target key start
LH: loop header
LB: loop body
LE: loop exit
PB: predicated region body
PF: predicated region fallthrough
CT: control target
= control target key end

     0   :  { %15 = vsyncpa [#allocation4], 0  ;;  %s6140_s0 = inlined_call_operand.hbm [shape: f32[2,16,64], index: 0, kind: input, shape index: {}]   ;;  %s6141_s1 = inlined_call_operand.vmem [shape: f32[2,10,64], index: 1, kind: input, shape index: {}]   ;;  %s6142_s2 = inlined_call_operand.vmem [shape: f32[64,64], index: 2, kind: input, shape index: {}]   ;;  %s6143_s3 = inlined_call_operand.vmem [shape: f32[1,64], index: 3, kind: input, shape index: {}]   ;;  %s6144_s4 = inlined_call_operand.vmem [shape: f32[64,32], index: 4, kind: input, shape index: {}]   ;;  %s6145_s5 = inlined_call_operand.vmem [shape: f32[1,32], index: 5, kind: input, shape index: {}]   ;;  %s6146_s6 = inlined_call_operand.vmem [shape: f32[64,64], index: 6, kind: input, shape index: {}]   ;;  %s6147_s7 = inlined_call_operand.vmem [shape: f32[1,64], index: 7, kind: input, shape index: {}]   ;;  %s6148_s8 = inlined_call_operand.hbm [shape: f32[2,16,64], index: 8, kind: output, shape index: {0}]   ;;  %s6149_s9 = inlined_call_operand.hbm [shape: f32[2,8,16,128], index: 9, kind: output, shape index: {1}]  }
   0x1   :  { %17 = vsyncpa [#allocation4 + $0x1], 0 }
   0x2   :  { %18 = vsyncpa [#allocation5], 0 }
   0x3   :  { %20 = vsyncpa [#allocation5 + $0x1], 0 }
   0x4   :  { %21 = vsyncpa [#allocation8], 0 }
   0x5   :  { %23 = vsyncpa [#allocation8 + $0x1], 0  ;;  %s4703_s30 = smov 0   ;;  %s4705_s10 = smov 0  }
   0x6   :  { %s4707_s11 = smov 0   ;;  %s4709_s12 = smov 0  }
   0x7   :  { %s4711_s13 = smov 0   ;;  %s4713_s14 = smov 0  }
   0x8 LB: > { %6153 = sst [smem:[#allocation12_spill]] %s4632_s13  ;;  %s3163_s15 = sadd.s32 4294967295, %s4636_s14   ;;  %s4636_s14 = sphi %s4713_s14, %s29_s14   ;;  %s4632_s13 = sphi %s4711_s13, %s6165_s13   ;;  %s4628_s12 = sphi %s4709_s12, %s6164_s12   ;;  %s4624_s11 = sphi %s4707_s11, %s6168_s11   ;;  %s4620_s10 = sphi %s4705_s10, %s6167_s10   ;;  %s4616_s30 = sphi %s4703_s30, %s6166_s30  }
   0x9   : > { %s3164_s16 = sadd.s32 4294967294, %s4636_s14   ;;  %s41_s17 = sadd.s32 1, %s4632_s13 }
   0xa   : > { %s50_s18 = sadd.s32 1, %s4624_s11  ;;  %p43_p0 = scmp.ge.s32.totalorder %s41_s17, 2 }
   0xb   : > { %p57_p1 = scmp.ne.s32.totalorder %s4624_s11, %s4620_s10  ;;  %p58_p2 = scmp.eq.s32.totalorder %s4636_s14, 0 }
   0xc   : > { %p63_p3 = scmp.ne.s32.totalorder %s4620_s10, %s4616_s30  ;;  %s6170_s17 = smov (%p43_p0, %s41_s17), 0 }
   0xd   : > { %6154 = sst [smem:[#allocation13_spill]] %s6170_s17  ;;  %p4744_p4 = por %p58_p2, %p57_p1 }
   0xe   : > { %p64_p5 = scmp.eq.s32.totalorder %s3163_s15, 0  ;;  %s45_s20 = ssub.s32 %s4632_s13, %s6170_s17 }
   0xf   : > { %p241_p6 = scmp.eq.s32.totalorder %s3163_s15, 1  ;;  %p48_p7 = scmp.eq.s32.totalorder %s45_s20, 0 }
  0x10   : > { %p4750_p8 = por %p64_p5, %p63_p3  ;;  %p247_p10 = scmp.eq.s32.totalorder %s3164_s16, 1 }
  0x11   : > { %p4754_p9 = por %p241_p6, %p57_p1  ;;  %p4356_p13 = scmp.lt.s32.totalorder %s4636_s14, 2 }
  0x12   : > { %s4759_s23 = scalar_select %p48_p7, %s4624_s11, %s50_s18  }
  0x13   : > { %p4761_p11 = por %p247_p10, %p63_p3  ;;  %s313_s25 = sand.u32 1, %s4624_s11  }
  0x14   : > { %6158 = sst [smem:[#allocation14_spill]] %s4759_s23  ;;  %s3167_s26 = sshll.u32 %s313_s25, 4 }
  0x15   : > { %s3365_s27 = sshll.u32 %s4632_s13, 8  ;;  %s317_s20 = scalar_lea.vmem [#allocation3], %s3167_s26 }
  0x16   : > { %s325_s15 = scalar_lea.hbm %s6140_s0, %s3365_s27  ;;  %s326_s17 = sshll.u32 %s317_s20, 4  ;;  %s327_s17 = int_to_ptr.vmem [resolvable:$true] %s326_s17 }
  0x17   : > { %p4774_p0 = pnand %p4356_p13, %p4744_p4  ;;  %p3170_p1 = scmp.ge.s32.totalorder %s4636_s14, 1 }
  0x18   : > { %s314_s18 = scalar_lea.sflag [#allocation4], %s313_s25  ;;  %s4511_s23 = scalar_lea.vmem %s327_s17, 256 }
  0x19   : > { %p4500_p2 = pneg %p4774_p0  ;;  %p4512_p3 = scmp.ne.s32.totalorder %s327_s17, %s4511_s23 }
  0x1a   : > { %s4638_s13 = smov [#allocation3]  }
  0x1b   : > { %p4514_p5 = pnand %p4512_p3, %p4500_p2  ;;  %s4516_s28 = sshll.u32 %s4638_s13, 4  ;;  %s4517_s28 = int_to_ptr.vmem [resolvable:$false] %s4516_s28 }
  0x1c   : > { %s4518_s26 = scalar_lea.vmem %s4517_s28, 512  ;;  %p4519_p7 = scmp.lt.s32.totalorder %s327_s17, %s4517_s28 }
  0x1d   : > { %p4515_p6 = pneg %p4514_p5  ;;  %p4520_p10 = scmp.lt.s32.totalorder %s4518_s26, %s4511_s23 }
  0x1f   : > { %p4521_p12 = por %p4520_p10, %p4519_p7 }
  0x21   : > { %p4522_p4 = pnand %p4521_p12, %p4515_p6 }
  0x23   : > { %4525 = shalt.err (!%p4522_p4)
}
  0x24   : > { %s4639_s19 = smov 128   ;;  %s4640_s25 = smov 8  }
  0x25   : > { %4348 = dma.hbm_to_vmem [thread:$0]  (!%p4774_p0), %s325_s15, 256, %s327_s17, %s314_s18, %s4639_s19, %s4639_s19, %s4640_s25  }
  0x26   : > { %p342_p13 = scmp.lt.s32.totalorder %s4636_s14, 3 }
  0x28   : > { %p343_p2 = pnand %p3170_p1, %p342_p13 }
  0x29   : > { %s4787_s13 = sand.u32 (!%p343_p2), 1, %s4620_s10  }
  0x2a   : > { %346 = sbr.rel (%p343_p2) target bundleno = 6388 (0x18f4), region = 52  ;;  %s6152_s23 = sshll.u32 (!%p343_p2), %s4787_s13, 4 }
  0x2b   : > { %s349_s27 = scalar_lea.sflag (!%p343_p2), [#allocation4], %s4787_s13  ;;  %s4793_s29 = scalar_lea.vmem (!%p343_p2), [#allocation3], %s6152_s23 }
  0x2f   : > { %4603 = dma.done.wait (%p4750_p8), %s349_s27, 256  }
  0x30   : > { %4605 = vsyncadd (%p4750_p8), %s349_s27, 4294967040  ;;  %p398_p12 = scmp.lt.s32.totalorder %s4628_s12, 1  ;;  %vm602_vm0 = vcmask 261120   ;;  %v4641_v0 = vmov 0.0   ;;  %v513_v1 = vld [vmem:[%s6144_s4 + $0x38] sm:$0xff]  ;;  %v512_v2 = vld [vmem:[%s6144_s4 + $0x30] sm:$0xff]  ;;  %v638_v51 = vlaneseq }
  0x31   : > { %618 = vst.msk [vmem:[#allocation2 + $0x78] sm:$0xff] %vm602_vm0, %v4641_v0  ;;  %603 = vst.msk [vmem:[#allocation2] sm:$0xff] %vm602_vm0, %v4641_v0  ;;  %3720 = vmatprep.subr.mxu1 %v513_v1  ;;  %v511_v3 = vld [vmem:[%s6144_s4 + $0x28] sm:$0xff]  ;;  %v414_v4 = vld [vmem:[%s6142_s2 + $0x38] sm:$0xff]  ;;  %vm422_vm1 = vcmask 523264   ;;  %vm649_vm2 = vcmask 64512  }
  0x32   : > { %604 = vst.msk [vmem:[#allocation2 + $0x8] sm:$0xff] %vm602_vm0, %v4641_v0  ;;  %605 = vst.msk [vmem:[#allocation2 + $0x10] sm:$0xff] %vm602_vm0, %v4641_v0  ;;  %s399_s17 = scalar_select %p398_p12, %s4628_s12, 1  ;;  %3721 = vmatpush3.msra.mxu1 %v513_v1  ;;  %v413_v5 = vld [vmem:[%s6142_s2 + $0x30] sm:$0xff]  ;;  %3701 = vmatprep.subr.mxu0 %v414_v4  ;;  %v510_v6 = vld [vmem:[%s6144_s4 + $0x20] sm:$0xff]  ;;  %vm620_vm3 = vcmask 254976  }
  0x33   : > { %606 = vst.msk [vmem:[#allocation2 + $0x18] sm:$0xff] %vm602_vm0, %v4641_v0  ;;  %607 = vst.msk [vmem:[#allocation2 + $0x20] sm:$0xff] %vm602_vm0, %v4641_v0  ;;  %3722 = vmatprep.subr.mxu1 %v512_v2  ;;  %3702 = vmatpush3.msra.mxu0 %v414_v4  ;;  %v412_v7 = vld [vmem:[%s6142_s2 + $0x28] sm:$0xff]  ;;  %v509_v9 = vld [vmem:[%s6144_s4 + $0x18] sm:$0xff]  ;;  %s4643_s26 = smov 112   ;;  %v5041_v53 = vand.u32 127, %v638_v51 }
  0x34   : > { %608 = vst.msk [vmem:[#allocation2 + $0x28] sm:$0xff] %vm602_vm0, %v4641_v0  ;;  %609 = vst.msk [vmem:[#allocation2 + $0x30] sm:$0xff] %vm602_vm0, %v4641_v0  ;;  %s3366_s21 = sshll.u32 %s399_s17, 4  ;;  %3723 = vmatpush3.msra.mxu1 %v512_v2  ;;  %3703 = vmatprep.subr.mxu0 %v413_v5  ;;  %v411_v10 = vld [vmem:[%s6142_s2 + $0x20] sm:$0xff]  ;;  %v508_v11 = vld [vmem:[%s6144_s4 + $0x10] sm:$0xff]  ;;  %s4644_s17 = smov 96  }
  0x35   : > { %610 = vst.msk [vmem:[#allocation2 + $0x38] sm:$0xff] %vm602_vm0, %v4641_v0  ;;  %611 = vst.msk [vmem:[#allocation2 + $0x40] sm:$0xff] %vm602_vm0, %v4641_v0  ;;  %s4837_s23 = scalar_lea.vmem %s6141_s1, %s3366_s21  ;;  %3724 = vmatprep.subr.mxu1 %v511_v3  ;;  %3704 = vmatpush3.msra.mxu0 %v413_v5  ;;  %v410_v12 = vld [vmem:[%s6142_s2 + $0x18] sm:$0xff]  ;;  %v507_v13 = vld [vmem:[%s6144_s4 + $0x8] sm:$0xff]  ;;  %vm640_vm4 = vcmp.lt.s32.totalorder %v5041_v53, 10  ;;  %s3173_s21 = sshll.u32 %s4787_s13, 7 }
  0x36   : > { %612 = vst.msk [vmem:[#allocation2 + $0x48] sm:$0xff] %vm602_vm0, %v4641_v0  ;;  %613 = vst.msk [vmem:[#allocation2 + $0x50] sm:$0xff] %vm602_vm0, %v4641_v0  ;;  %v504_v8 = vld [vmem:[%s4837_s23] sm:$0xff]  ;;  %3725 = vmatpush3.msra.mxu1 %v511_v3  ;;  %3705 = vmatprep.subr.mxu0 %v412_v7  ;;  %v409_v14 = vld [vmem:[%s6142_s2 + $0x10] sm:$0xff]  ;;  %s5133_s19 = scalar_lea.vmem [#allocation7], %s3173_s21  ;;  %s4647_s27 = smov 88  }
  0x37   : > { %614 = vst.msk [vmem:[#allocation2 + $0x58] sm:$0xff] %vm602_vm0, %v4641_v0  ;;  %615 = vst.msk [vmem:[#allocation2 + $0x60] sm:$0xff] %vm602_vm0, %v4641_v0  ;;  %3726 = vmatprep.subr.mxu1 %v510_v6  ;;  %3736 = vmatprep.mubr.msk.f32.mxu1 %vm422_vm1, %v504_v8  ;;  %v506_v15 = vld [vmem:[%s6144_s4] sm:$0xff]  ;;  %v408_v16 = vld [vmem:[%s6142_s2 + $0x8] sm:$0xff]  ;;  %s4648_s20 = smov 72   ;;  %s3368_s21 = sshll.u32 %s4628_s12, 11 }
  0x38   : > { %616 = vst.msk [vmem:[#allocation2 + $0x68] sm:$0xff] %vm602_vm0, %v4641_v0  ;;  %617 = vst.msk [vmem:[#allocation2 + $0x70] sm:$0xff] %vm602_vm0, %v4641_v0  ;;  %3727 = vmatpush3.msra.mxu1 %v510_v6  ;;  %3706 = vmatpush3.msra.mxu0 %v412_v7  ;;  %v505_v17 = vld [vmem:[%s4837_s23 + $0x8] sm:$0x3]  ;;  %v407_v18 = vld [vmem:[%s6142_s2] sm:$0xff]  ;;  %s4642_s23 = smov 120  }
  0x39   : > { %3728 = vmatprep.subr.mxu1 %v509_v9  ;;  %3707 = vmatprep.subr.mxu0 %v411_v10  ;;  %v405_v19 = vld [vmem:[%s4793_s29] sm:$0xff]  ;;  %v406_v20 = vld [vmem:[%s4793_s29 + $0x8] sm:$0xff]  ;;  %s4645_s29 = smov 80  }
  0x3a   : > { %3729 = vmatpush3.msra.mxu1 %v509_v9  ;;  %3708 = vmatpush3.msra.mxu0 %v411_v10  ;;  %v4878_v21 = vld [vmem:[#allocation2 + $0x78] sm:$0xff]  ;;  %v4964_v32 = vld [vmem:[#allocation2 + $0x20] sm:$0xff]  ;;  %v4980_v34 = vld [vmem:[#allocation2 + $0x10] sm:$0xff] }
  0x3b   : > { %3730 = vmatprep.subr.mxu1 %v508_v11  ;;  %3709 = vmatprep.subr.mxu0 %v410_v12  ;;  %v4948_v30 = vld [vmem:[#allocation2 + $0x30] sm:$0xff]  ;;  %v4956_v31 = vld [vmem:[#allocation2 + $0x28] sm:$0xff]  ;;  %v4972_v33 = vld [vmem:[#allocation2 + $0x18] sm:$0xff] }
  0x3c   : > { %3731 = vmatpush3.msra.mxu1 %v508_v11  ;;  %3710 = vmatpush3.msra.mxu0 %v410_v12  ;;  %v4932_v28 = vld [vmem:[#allocation2 + $0x40] sm:$0xff]  ;;  %v4940_v29 = vld [vmem:[#allocation2 + $0x38] sm:$0xff] }
  0x3d   : > { %3732 = vmatprep.subr.mxu1 %v507_v13  ;;  %3711 = vmatprep.subr.mxu0 %v409_v14  ;;  %v4916_v26 = vld [vmem:[#allocation2 + $0x50] sm:$0xff]  ;;  %v4924_v27 = vld [vmem:[#allocation2 + $0x48] sm:$0xff]  ;;  %v3179_v39 = vld [vmem:[%s6145_s5] ss:$0 sm:$0xff] }
  0x3e   : > { %3733 = vmatpush3.msra.mxu1 %v507_v13  ;;  %3712 = vmatpush3.msra.mxu0 %v409_v14  ;;  %v4900_v24 = vld [vmem:[#allocation2 + $0x60] sm:$0xff]  ;;  %v4908_v25 = vld [vmem:[#allocation2 + $0x58] sm:$0xff] }
  0x3f   : > { %3734 = vmatprep.subr.mxu1 %v506_v15  ;;  %3713 = vmatprep.subr.mxu0 %v408_v16  ;;  %v4881_v22 = vld [vmem:[#allocation2 + $0x70] sm:$0xff]  ;;  %v4892_v23 = vld [vmem:[#allocation2 + $0x68] sm:$0xff]  ;;  %v3176_v45 = vld [vmem:[%s6143_s3] ss:$0 sm:$0xff] }
  0x40   : > { %3735 = vmatpush3.msra.mxu1 %v506_v15  ;;  %3714 = vmatpush3.msra.mxu0 %v408_v16  ;;  %v648_v53 = vld [vmem:[%s6146_s6 + $0x38] sm:$0xff] }
  0x41   : > { %3737 = vmatmul.mubr.msk.f32.vlgmr.msra.gmra.mxu1 %vm422_vm1, %v505_v17  ;;  %3715 = vmatprep.subr.mxu0 %v407_v18 }
  0x42   : > { %3717 = vmatprep.mubr.msk.f32.mxu0 %vm422_vm1, %v405_v19  ;;  %3716 = vmatpush3.msra.mxu0 %v407_v18 }
  0x43   : > { %833 = vrot.lane.b32.xlu1 %v4878_v21, %s4642_s23  ;;  %3718 = vmatmul.mubr.msk.f32.vlgmr.msra.gmra.mxu0 %vm422_vm1, %v406_v20 }
  0x44   : > { %3739 = vmatprep.subr.msk.mxu0 %vm649_vm2, %v4878_v21 }
  0x45   : > { %3740 = vmatpush3.xpose.msk.msra.mxu0 %vm649_vm2, %v4878_v21 }
  0x46   : > { %3741 = vmatprep.subr.msk.mxu0 %vm649_vm2, %v4881_v22 }
  0x47   : > { %831 = vrot.lane.b32.xlu1 %v4881_v22, %s4642_s23 }
  0x49   : > { %3742 = vmatpush3.xpose.msk.msra.mxu0 %vm649_vm2, %v4881_v22 }
  0x4a   : > { %3743 = vmatprep.subr.msk.mxu0 %vm649_vm2, %v4892_v23 }
  0x4b   : > { %829 = vrot.lane.b32.xlu1 %v4892_v23, %s4642_s23 }
  0x4d   : > { %3744 = vmatpush3.xpose.msk.msra.mxu0 %vm649_vm2, %v4892_v23 }
  0x4e   : > { %3745 = vmatprep.subr.msk.mxu0 %vm649_vm2, %v4900_v24 }
  0x4f   : > { %827 = vrot.lane.b32.xlu1 %v4900_v24, %s4642_s23 }
  0x51   : > { %3746 = vmatpush3.xpose.msk.msra.mxu0 %vm649_vm2, %v4900_v24 }
  0x52   : > { %3747 = vmatprep.subr.msk.mxu0 %vm649_vm2, %v4908_v25 }
  0x53   : > { %823 = vrot.lane.b32.xlu1 %v4916_v26, %s4642_s23 }
  0x55   : > { %3748 = vmatpush3.xpose.msk.msra.mxu0 %vm649_vm2, %v4908_v25 }
  0x56   : > { %3749 = vmatprep.subr.msk.mxu0 %vm649_vm2, %v4916_v26 }
  0x57   : > { %821 = vrot.lane.b32.xlu1 %v4924_v27, %s4642_s23 }
  0x59   : > { %3750 = vmatpush3.xpose.msk.msra.mxu0 %vm649_vm2, %v4916_v26 }
  0x5a   : > { %3751 = vmatprep.subr.msk.mxu0 %vm649_vm2, %v4924_v27 }
  0x5b   : > { %819 = vrot.lane.b32.xlu1 %v4932_v28, %s4642_s23 }
  0x5d   : > { %3752 = vmatpush3.xpose.msk.msra.mxu0 %vm649_vm2, %v4924_v27 }
  0x5e   : > { %3753 = vmatprep.subr.msk.mxu0 %vm649_vm2, %v4932_v28 }
  0x5f   : > { %817 = vrot.lane.b32.xlu1 %v4940_v29, %s4642_s23 }
  0x61   : > { %3754 = vmatpush3.xpose.msk.msra.mxu0 %vm649_vm2, %v4932_v28 }
  0x62   : > { %3755 = vmatprep.subr.msk.mxu0 %vm649_vm2, %v4940_v29 }
  0x63   : > { %815 = vrot.lane.b32.xlu1 %v4948_v30, %s4642_s23 }
  0x65   : > { %3756 = vmatpush3.xpose.msk.msra.mxu0 %vm649_vm2, %v4940_v29 }
  0x66   : > { %3757 = vmatprep.subr.msk.mxu0 %vm649_vm2, %v4948_v30 }
  0x67   : > { %813 = vrot.lane.b32.xlu1 %v4956_v31, %s4642_s23 }
  0x69   : > { %3758 = vmatpush3.xpose.msk.msra.mxu0 %vm649_vm2, %v4948_v30 }
  0x6a   : > { %3759 = vmatprep.subr.msk.mxu0 %vm649_vm2, %v4956_v31 }
  0x6b   : > { %809 = vrot.lane.b32.xlu1 %v4972_v33, %s4642_s23 }
  0x6d   : > { %3760 = vmatpush3.xpose.msk.msra.mxu0 %vm649_vm2, %v4956_v31 }
  0x6e   : > { %3761 = vmatprep.subr.msk.mxu0 %vm649_vm2, %v4964_v32 }
  0x71   : > { %3762 = vmatpush3.xpose.msk.msra.mxu0 %vm649_vm2, %v4964_v32 }
  0x72   : > { %3763 = vmatprep.subr.msk.mxu0 %vm649_vm2, %v4972_v33 }
  0x75   : > { %3764 = vmatpush3.xpose.msk.msra.mxu0 %vm649_vm2, %v4972_v33 }
  0x76   : > { %3765 = vmatprep.subr.msk.mxu0 %vm649_vm2, %v4980_v34 }
  0x79   : > { %3766 = vmatpush3.xpose.msk.msra.mxu0 %vm649_vm2, %v4980_v34 }
  0xb5   : > { %v4986_v35 = vpop.permute.xlu1 %833 }
  0xb6   : > { %3774 = vmatprep.subr.mxu1 %v4986_v35 }
  0xb7   : > { %3775 = vmatpush3.msra.mxu1 %v4986_v35 }
  0xb9   : > { %v4990_v36 = vpop.permute.xlu1 %831 }
  0xba   : > { %3776 = vmatprep.subr.mxu1 %v4990_v36 }
  0xbb   : > { %3777 = vmatpush3.msra.mxu1 %v4990_v36 }
  0xbd   : > { %v4994_v37 = vpop.permute.xlu1 %829 }
  0xbe   : > { %3778 = vmatprep.subr.mxu1 %v4994_v37 }
  0xbf   : > { %3779 = vmatpush3.msra.mxu1 %v4994_v37 }
  0xc1   : > { %v4998_v38 = vpop.permute.xlu1 %827 }
  0xc2   : > { %3780 = vmatprep.subr.mxu1 %v4998_v38 }
  0xc3   : > { %3781 = vmatpush3.msra.mxu1 %v4998_v38 }
  0xc5   : > { %v5054_v59 = vpop.permute.xlu1 %823 }
  0xc9   : > { %v5056_v60 = vpop.permute.xlu1 %821 }
  0xcd   : > { %v5058_v61 = vpop.permute.xlu1 %819 }
  0xd1   : > { %v5060_v0 = vpop.permute.xlu1 %817 }
  0xd5   : > { %v5068_v6 = vpop.permute.xlu1 %815 }
  0xd9   : > { %v5082_v7 = vpop.permute.xlu1 %813 }
  0xdd   : > { %v5098_v10 = vpop.permute.xlu1 %809 }
 0x101   : > { %v3738_v40 = vpop.f32.mrf.mxu1 }
 0x102   : > { %v599_v41 = vadd.f32 %v3738_v40, %v3179_v39  ;;  %v641_v40 = vld [vmem:[%s6146_s6] sm:$0xff] }
 0x103   : > { %v593_v42 = vpop.f32.mrf.mxu1  ;;  %v3719_v44 = vpop.f32.mrf.mxu0 }
 0x104   : > { %621 = vst.msk [vmem:[#allocation2 + $0x8] sm:$0x3] %vm620_vm3, %v599_v41  ;;  %v594_v43 = vadd.f32 %v3179_v39, %v593_v42  ;;  %v5029_v50 = vadd.f32 %v3719_v44, %v3176_v45 }
 0x105   : > { %v495_v46 = vpop.f32.mrf.mxu0 }
 0x106   : > { %619 = vst.msk [vmem:[#allocation2] sm:$0xff] %vm602_vm0, %v594_v43  ;;  %v5009_v47 = vadd.f32 %v3176_v45, %v495_v46 }
 0x108   : > { %3771 = vmatprep.mubr.msk.f32.mxu0 %vm649_vm2, %v5009_v47 }
 0x10b   : > { %v5013_v48 = vld [vmem:[#allocation2 + $0x8] sm:$0xff] }
 0x10c   : > { %805 = vrot.lane.b32.xlu1 %v5013_v48, %s4642_s23  ;;  %3767 = vmatprep.subr.msk.mxu0 %vm649_vm2, %v5013_v48 }
 0x10d   : > { %3768 = vmatpush3.xpose.msk.msra.mxu0 %vm649_vm2, %v5013_v48  ;;  %v5021_v49 = vld [vmem:[#allocation2] sm:$0xff] }
 0x10e   : > { %3769 = vmatprep.subr.msk.mxu0 %vm649_vm2, %v5021_v49 }
 0x110   : > { %926 = vrot.lane.b32.xlu1 %v5009_v47, %s4643_s26 }
 0x111   : > { %3770 = vmatpush3.xpose.msk.msra.mxu0 %vm649_vm2, %v5021_v49 }
 0x112   : > { %3844 = vmatprep.subr.mxu0 %v4986_v35 }
 0x114   : > { %3772 = vmatmul.mubr.msk.f32.vlgmr.msra.gmra.mxu0 %vm649_vm2, %v5029_v50 }
 0x115   : > { %3845 = vmatpush3.msra.mxu0 %v4986_v35 }
 0x116   : > { %3846 = vmatprep.subr.mxu0 %v4990_v36 }
 0x117   : > { %3847 = vmatpush3.msra.mxu0 %v4990_v36 }
 0x118   : > { %3848 = vmatprep.subr.mxu0 %v4994_v37 }
 0x119   : > { %3849 = vmatpush3.msra.mxu0 %v4994_v37 }
 0x11a   : > { %3850 = vmatprep.subr.mxu0 %v4998_v38 }
 0x11b   : > { %3851 = vmatpush3.msra.mxu0 %v4998_v38 }
 0x17e   : > { %v5112_v13 = vpop.permute.xlu1 %805 }
 0x182   : > { %v927_v39 = vpop.permute.xlu1 %926 }
 0x1d4   : > { %v3773_v52 = vpop.f32.mrf.mxu0 }
 0x1d5   : > { %v780_v56 = vmul.f32 0.35355338, %v3773_v52 }
 0x1d6   : > { %v770_v54 = vpop.f32.mrf.mxu0 }
 0x1d7   : > { %v779_v55 = vmul.f32 0.35355338, %v770_v54  ;;  %v782_v58 = vsel %vm640_vm4, %v780_v56, -1e+30 }
 0x1d9   : > { %v781_v57 = vsel %vm640_vm4, %v779_v55, -1e+30 }
 0x1da   : > { %783 = vmax.xlane.f32.xlu0 %v781_v57 }
 0x1de   : > { %785 = vmax.xlane.f32.xlu0 %v782_v58 }
 0x1f4   : > { %825 = vrot.lane.b32.xlu0 %v4908_v25, %s4642_s23 }
 0x1f8   : > { %811 = vrot.lane.b32.xlu0 %v4964_v32, %s4642_s23 }
 0x1fc   : > { %807 = vrot.lane.b32.xlu0 %v4980_v34, %s4642_s23 }
 0x263   : > { %v784_v62 = vpop.xlane.xlu0 %783 }
 0x264   : > { %v787_v1 = vsub.f32 %v781_v57, %v784_v62 }
 0x266   : > { %v789_v5 = vmul.f32 1.442695, %v787_v1 }
 0x267   : > { %v786_v63 = vpop.xlane.xlu0 %785 }
 0x268   : > { %v788_v2 = vsub.f32 %v782_v58, %v786_v63 }
 0x26a   : > { %v791_v3 = vmul.f32 1.442695, %v788_v2 }
 0x26b   : > { %v5062_v4 = vpop.permute.xlu0 %825 }
 0x26c   : > { %4418 = vpow2.f32 %v791_v3  ;;  %3782 = vmatprep.subr.mxu1 %v5062_v4  ;;  %3852 = vmatprep.subr.mxu0 %v5062_v4  ;;  %v643_v3 = vld [vmem:[%s6146_s6 + $0x10] sm:$0xff] }
 0x26d   : > { %3783 = vmatpush3.msra.mxu1 %v5062_v4  ;;  %3853 = vmatpush3.msra.mxu0 %v5062_v4  ;;  %4420 = vpow2.f32 %v789_v5 }
 0x26e   : > { %3784 = vmatprep.subr.mxu1 %v5054_v59  ;;  %3854 = vmatprep.subr.mxu0 %v5054_v59 }
 0x26f   : > { %3785 = vmatpush3.msra.mxu1 %v5054_v59  ;;  %3855 = vmatpush3.msra.mxu0 %v5054_v59  ;;  %v5090_v8 = vpop.permute.xlu0 %811 }
 0x270   : > { %3786 = vmatprep.subr.mxu1 %v5056_v60  ;;  %3856 = vmatprep.subr.mxu0 %v5056_v60 }
 0x271   : > { %3787 = vmatpush3.msra.mxu1 %v5056_v60  ;;  %3857 = vmatpush3.msra.mxu0 %v5056_v60 }
 0x272   : > { %3788 = vmatprep.subr.mxu1 %v5058_v61  ;;  %3858 = vmatprep.subr.mxu0 %v5058_v61 }
 0x273   : > { %3789 = vmatpush3.msra.mxu1 %v5058_v61  ;;  %3859 = vmatpush3.msra.mxu0 %v5058_v61  ;;  %v5105_v11 = vpop.permute.xlu0 %807 }
 0x274   : > { %3790 = vmatprep.subr.mxu1 %v5060_v0  ;;  %3860 = vmatprep.subr.mxu0 %v5060_v0 }
 0x275   : > { %3791 = vmatpush3.msra.mxu1 %v5060_v0  ;;  %3861 = vmatpush3.msra.mxu0 %v5060_v0 }
 0x276   : > { %3792 = vmatprep.subr.mxu1 %v5068_v6  ;;  %3862 = vmatprep.subr.mxu0 %v5068_v6 }
 0x277   : > { %3793 = vmatpush3.msra.mxu1 %v5068_v6  ;;  %3863 = vmatpush3.msra.mxu0 %v5068_v6 }
 0x278   : > { %3794 = vmatprep.subr.mxu1 %v5082_v7  ;;  %3864 = vmatprep.subr.mxu0 %v5082_v7 }
 0x279   : > { %v4419_v9 = vpop.eup %4418  ;;  %3795 = vmatpush3.msra.mxu1 %v5082_v7  ;;  %3865 = vmatpush3.msra.mxu0 %v5082_v7 }
 0x27a   : > { %795 = vadd.xlane.f32.xlu0 %v4419_v9  ;;  %3796 = vmatprep.subr.mxu1 %v5090_v8  ;;  %v4421_v12 = vpop.eup %4420 }
 0x27b   : > { %3866 = vmatprep.subr.mxu0 %v5090_v8  ;;  %3797 = vmatpush3.msra.mxu1 %v5090_v8 }
 0x27c   : > { %3867 = vmatpush3.msra.mxu0 %v5090_v8  ;;  %3798 = vmatprep.subr.mxu1 %v5098_v10 }
 0x27d   : > { %3868 = vmatprep.subr.mxu0 %v5098_v10  ;;  %3799 = vmatpush3.msra.mxu1 %v5098_v10 }
 0x27e   : > { %3869 = vmatpush3.msra.mxu0 %v5098_v10  ;;  %793 = vadd.xlane.f32.xlu0 %v4421_v12 }
 0x27f   : > { %3800 = vmatprep.subr.mxu1 %v5105_v11  ;;  %3870 = vmatprep.subr.mxu0 %v5105_v11 }
 0x280   : > { %3801 = vmatpush3.msra.mxu1 %v5105_v11  ;;  %3871 = vmatpush3.msra.mxu0 %v5105_v11 }
 0x281   : > { %3802 = vmatprep.subr.mxu1 %v5112_v13  ;;  %3872 = vmatprep.subr.mxu0 %v5112_v13 }
 0x282   : > { %3803 = vmatpush3.msra.mxu1 %v5112_v13  ;;  %3873 = vmatpush3.msra.mxu0 %v5112_v13 }
 0x294   : > { %803 = vrot.lane.b32.xlu0 %v5021_v49, %s4642_s23 }
 0x298   : > { %928 = vrot.lane.b32.xlu0 %v5029_v50, %s4643_s26 }
 0x303   : > { %v796_v14 = vpop.xlane.xlu0 %795 }
 0x304   : > { %4422 = vrcp.f32 %v796_v14 }
 0x307   : > { %v794_v15 = vpop.xlane.xlu0 %793 }
 0x308   : > { %4424 = vrcp.f32 %v794_v15 }
 0x30b   : > { %v5124_v16 = vpop.permute.xlu0 %803 }
 0x30c   : > { %3804 = vmatprep.subr.mxu1 %v5124_v16  ;;  %3874 = vmatprep.subr.mxu0 %v5124_v16 }
 0x30d   : > { %3805 = vmatpush3.msra.mxu1 %v5124_v16  ;;  %3875 = vmatpush3.msra.mxu0 %v5124_v16 }
 0x30e   : > { %3809 = vmatprep.subr.msk.mxu1 %vm649_vm2, %v4878_v21  ;;  %3879 = vmatprep.subr.mxu0 %v643_v3 }
 0x30f   : > { %v929_v41 = vpop.permute.xlu0 %928 }
 0x311   : > { %v4423_v17 = vpop.eup %4422 }
 0x312   : > { %v800_v18 = vmul.f32 %v4423_v17, %v4419_v9 }
 0x314   : > { %802 = vst [vmem:[%s5133_s19 + $0x8] sm:$0xff] %v800_v18 }
 0x315   : > { %v4425_v19 = vpop.eup %4424 }
 0x316   : > { %v799_v20 = vmul.f32 %v4425_v19, %v4421_v12 }
 0x318   : > { %801 = vst [vmem:[%s5133_s19] sm:$0xff] %v799_v20  ;;  %3806 = vmatprep.mubr.f32.mxu1 %v799_v20 }
 0x319   : > { %3807 = vmatmul.mubr.f32.vlgmr.msra.gmra.mxu1 %v800_v18 }
 0x31a   : > { %3810 = vmatpush3.xpose.msk.msra.mxu1 %vm649_vm2, %v4878_v21  ;;  %3841 = vmatprep.mubr.msk.f32.mxu1 %vm649_vm2, %v927_v39 }
 0x31b   : > { %3811 = vmatprep.subr.msk.mxu1 %vm649_vm2, %v4881_v22 }
 0x31e   : > { %3812 = vmatpush3.xpose.msk.msra.mxu1 %vm649_vm2, %v4881_v22 }
 0x31f   : > { %3813 = vmatprep.subr.msk.mxu1 %vm649_vm2, %v4892_v23 }
 0x322   : > { %3814 = vmatpush3.xpose.msk.msra.mxu1 %vm649_vm2, %v4892_v23 }
 0x323   : > { %3815 = vmatprep.subr.msk.mxu1 %vm649_vm2, %v4900_v24 }
 0x326   : > { %3816 = vmatpush3.xpose.msk.msra.mxu1 %vm649_vm2, %v4900_v24 }
 0x327   : > { %3817 = vmatprep.subr.msk.mxu1 %vm649_vm2, %v4908_v25 }
 0x32a   : > { %3818 = vmatpush3.xpose.msk.msra.mxu1 %vm649_vm2, %v4908_v25 }
 0x32b   : > { %3819 = vmatprep.subr.msk.mxu1 %vm649_vm2, %v4916_v26 }
 0x32e   : > { %3820 = vmatpush3.xpose.msk.msra.mxu1 %vm649_vm2, %v4916_v26 }
 0x32f   : > { %3821 = vmatprep.subr.msk.mxu1 %vm649_vm2, %v4924_v27 }
 0x332   : > { %3822 = vmatpush3.xpose.msk.msra.mxu1 %vm649_vm2, %v4924_v27 }
 0x333   : > { %3823 = vmatprep.subr.msk.mxu1 %vm649_vm2, %v4932_v28 }
 0x336   : > { %3824 = vmatpush3.xpose.msk.msra.mxu1 %vm649_vm2, %v4932_v28 }
 0x337   : > { %3825 = vmatprep.subr.msk.mxu1 %vm649_vm2, %v4940_v29 }
 0x33a   : > { %3826 = vmatpush3.xpose.msk.msra.mxu1 %vm649_vm2, %v4940_v29 }
 0x33b   : > { %3827 = vmatprep.subr.msk.mxu1 %vm649_vm2, %v4948_v30 }
 0x33e   : > { %3828 = vmatpush3.xpose.msk.msra.mxu1 %vm649_vm2, %v4948_v30 }
 0x33f   : > { %3829 = vmatprep.subr.msk.mxu1 %vm649_vm2, %v4956_v31 }
 0x342   : > { %3830 = vmatpush3.xpose.msk.msra.mxu1 %vm649_vm2, %v4956_v31 }
 0x343   : > { %3831 = vmatprep.subr.msk.mxu1 %vm649_vm2, %v4964_v32 }
 0x346   : > { %3832 = vmatpush3.xpose.msk.msra.mxu1 %vm649_vm2, %v4964_v32 }
 0x347   : > { %3833 = vmatprep.subr.msk.mxu1 %vm649_vm2, %v4972_v33 }
 0x34a   : > { %3834 = vmatpush3.xpose.msk.msra.mxu1 %vm649_vm2, %v4972_v33 }
 0x34b   : > { %3835 = vmatprep.subr.msk.mxu1 %vm649_vm2, %v4980_v34 }
 0x34e   : > { %3836 = vmatpush3.xpose.msk.msra.mxu1 %vm649_vm2, %v4980_v34 }
 0x34f   : > { %3837 = vmatprep.subr.msk.mxu1 %vm649_vm2, %v5013_v48 }
 0x352   : > { %3838 = vmatpush3.xpose.msk.msra.mxu1 %vm649_vm2, %v5013_v48 }
 0x353   : > { %3839 = vmatprep.subr.msk.mxu1 %vm649_vm2, %v5021_v49 }
 0x356   : > { %3840 = vmatpush3.xpose.msk.msra.mxu1 %vm649_vm2, %v5021_v49 }
 0x357   : > { %3884 = vmatprep.subr.mxu1 %v641_v40 }
 0x359   : > { %3842 = vmatmul.mubr.msk.f32.vlgmr.msra.gmra.mxu1 %vm649_vm2, %v929_v41 }
 0x35a   : > { %3885 = vmatpush3.msra.mxu1 %v641_v40  ;;  %v645_v40 = vld [vmem:[%s6146_s6 + $0x20] sm:$0xff] }
 0x35b   : > { %3924 = vmatprep.subr.mxu1 %v4986_v35 }
 0x3d9   : > { %v3808_v42 = vpop.f32.mrf.mxu1 }
 0x3db   : > { %v917_v43 = vpop.f32.mrf.mxu1 }
 0x3dc   : > { %3886 = vmatprep.mubr.msk.f32.mxu1 %vm649_vm2, %v917_v43 }
 0x3dd   : > { %3887 = vmatmul.mubr.msk.f32.vlgmr.msra.gmra.mxu1 %vm649_vm2, %v3808_v42 }
 0x3de   : > { %3925 = vmatpush3.msra.mxu1 %v4986_v35 }
 0x3df   : > { %3926 = vmatprep.subr.mxu1 %v4990_v36 }
 0x3e0   : > { %3927 = vmatpush3.msra.mxu1 %v4990_v36 }
 0x3e1   : > { %3928 = vmatprep.subr.mxu1 %v4994_v37 }
 0x3e2   : > { %3929 = vmatpush3.msra.mxu1 %v4994_v37 }
 0x3e3   : > { %3930 = vmatprep.subr.mxu1 %v4998_v38 }
 0x3e4   : > { %3931 = vmatpush3.msra.mxu1 %v4998_v38 }
 0x3e5   : > { %3932 = vmatprep.subr.mxu1 %v5062_v4 }
 0x3e6   : > { %3933 = vmatpush3.msra.mxu1 %v5062_v4 }
 0x3e7   : > { %3934 = vmatprep.subr.mxu1 %v5054_v59 }
 0x3e8   : > { %3935 = vmatpush3.msra.mxu1 %v5054_v59 }
 0x3e9   : > { %3936 = vmatprep.subr.mxu1 %v5056_v60 }
 0x3ea   : > { %3937 = vmatpush3.msra.mxu1 %v5056_v60 }
 0x3eb   : > { %3938 = vmatprep.subr.mxu1 %v5058_v61 }
 0x3ec   : > { %3939 = vmatpush3.msra.mxu1 %v5058_v61 }
 0x3ed   : > { %3940 = vmatprep.subr.mxu1 %v5060_v0 }
 0x3ee   : > { %3941 = vmatpush3.msra.mxu1 %v5060_v0 }
 0x3ef   : > { %3942 = vmatprep.subr.mxu1 %v5068_v6 }
 0x3f0   : > { %3943 = vmatpush3.msra.mxu1 %v5068_v6 }
 0x3f1   : > { %3944 = vmatprep.subr.mxu1 %v5082_v7 }
 0x3f2   : > { %3945 = vmatpush3.msra.mxu1 %v5082_v7 }
 0x3f3   : > { %3946 = vmatprep.subr.mxu1 %v5090_v8 }
 0x3f4   : > { %3947 = vmatpush3.msra.mxu1 %v5090_v8 }
 0x3f5   : > { %3948 = vmatprep.subr.mxu1 %v5098_v10 }
 0x3f6   : > { %3949 = vmatpush3.msra.mxu1 %v5098_v10 }
 0x3f7   : > { %3950 = vmatprep.subr.mxu1 %v5105_v11 }
 0x3f8   : > { %3951 = vmatpush3.msra.mxu1 %v5105_v11 }
 0x3f9   : > { %3952 = vmatprep.subr.mxu1 %v5112_v13 }
 0x3fa   : > { %3953 = vmatpush3.msra.mxu1 %v5112_v13 }
 0x3fb   : > { %3954 = vmatprep.subr.mxu1 %v5124_v16 }
 0x3fc   : > { %3955 = vmatpush3.msra.mxu1 %v5124_v16 }
 0x3fd   : > { %3959 = vmatprep.subr.mxu1 %v645_v40 }
 0x419   : > { %v3843_v44 = vpop.f32.mrf.mxu1 }
 0x41a   : > { %v1010_v45 = vmul.f32 0.35355338, %v3843_v44 }
 0x41b   : > { %v1000_v46 = vpop.f32.mrf.mxu1 }
 0x41c   : > { %v1009_v51 = vmul.f32 0.35355338, %v1000_v46  ;;  %v1012_v52 = vsel %vm640_vm4, %v1010_v45, -1e+30 }
 0x41d   : > { %1015 = vmax.xlane.f32.xlu0 %v1012_v52 }
 0x41e   : > { %v1011_v54 = vsel %vm640_vm4, %v1009_v51, -1e+30 }
 0x41f   : > { %1013 = vmax.xlane.f32.xlu1 %v1011_v54 }
 0x49d   : > { %v3888_v51 = vpop.f32.mrf.mxu1 }
 0x4a6   : > { %v1016_v55 = vpop.xlane.xlu0 %1015 }
 0x4a7   : > { %v1018_v56 = vsub.f32 %v1012_v52, %v1016_v55  ;;  %v1262_v52 = vpop.f32.mrf.mxu1 }
 0x4a8   : > { %v1014_v57 = vpop.xlane.xlu1 %1013 }
 0x4a9   : > { %v1021_v58 = vmul.f32 1.442695, %v1018_v56  ;;  %v1017_v62 = vsub.f32 %v1011_v54, %v1014_v57 }
 0x4ab   : > { %4426 = vpow2.f32 %v1021_v58  ;;  %v1019_v63 = vmul.f32 1.442695, %v1017_v62 }
 0x4ad   : > { %4428 = vpow2.f32 %v1019_v63 }
 0x4b8   : > { %v4427_v1 = vpop.eup %4426 }
 0x4b9   : > { %1025 = vadd.xlane.f32.xlu1 %v4427_v1 }
 0x4ba   : > { %v4429_v2 = vpop.eup %4428 }
 0x4bb   : > { %1023 = vadd.xlane.f32.xlu0 %v4429_v2 }
 0x4ca   : > { %1273 = vrot.lane.b32.xlu1 %v5029_v50, %s4644_s17 }
 0x4d1   : > { %1271 = vrot.lane.b32.xlu0 %v5009_v47, %s4644_s17  ;;  %s2996_s17 = scalar_lea.sflag [#allocation8], %s4787_s13 }
 0x542   : > { %v1026_v5 = vpop.xlane.xlu1 %1025 }
 0x543   : > { %4430 = vrcp.f32 %v1026_v5 }
 0x544   : > { %v1024_v9 = vpop.xlane.xlu0 %1023 }
 0x545   : > { %4432 = vrcp.f32 %v1024_v9 }
 0x546   : > { %v1274_v39 = vpop.permute.xlu1 %1273 }
 0x548   : > { %v1272_v20 = vpop.permute.xlu0 %1271 }
 0x550   : > { %v4431_v12 = vpop.eup %4430 }
 0x551   : > { %v1030_v14 = vmul.f32 %v4431_v12, %v4427_v1 }
 0x552   : > { %v4433_v15 = vpop.eup %4432 }
 0x553   : > { %v1029_v17 = vmul.f32 %v4433_v15, %v4429_v2  ;;  %3219 = vst [vmem:[%s5133_s19 + $0x28] sm:$0xff] %v1030_v14 }
 0x555   : > { %3218 = vst [vmem:[%s5133_s19 + $0x20] sm:$0xff] %v1029_v17  ;;  %3876 = vmatprep.mubr.f32.mxu0 %v1029_v17 }
 0x556   : > { %3877 = vmatmul.mubr.f32.vlgmr.msra.gmra.mxu0 %v1030_v14 }
 0x557   : > { %3880 = vmatpush3.msra.mxu0 %v643_v3 }
 0x558   : > { %3889 = vmatprep.subr.msk.mxu0 %vm649_vm2, %v4878_v21 }
 0x616   : > { %v3878_v18 = vpop.f32.mrf.mxu0 }
 0x618   : > { %v1100_v19 = vpop.f32.mrf.mxu0 }
 0x619   : > { %3881 = vmatprep.mubr.msk.f32.mxu0 %vm649_vm2, %v1100_v19 }
 0x61a   : > { %3882 = vmatmul.mubr.msk.f32.vlgmr.msra.gmra.mxu0 %vm649_vm2, %v3878_v18 }
 0x61b   : > { %3890 = vmatpush3.xpose.msk.msra.mxu0 %vm649_vm2, %v4878_v21  ;;  %3921 = vmatprep.mubr.msk.f32.mxu0 %vm649_vm2, %v1272_v20 }
 0x61c   : > { %3891 = vmatprep.subr.msk.mxu0 %vm649_vm2, %v4881_v22 }
 0x61f   : > { %3892 = vmatpush3.xpose.msk.msra.mxu0 %vm649_vm2, %v4881_v22 }
 0x620   : > { %3893 = vmatprep.subr.msk.mxu0 %vm649_vm2, %v4892_v23 }
 0x623   : > { %3894 = vmatpush3.xpose.msk.msra.mxu0 %vm649_vm2, %v4892_v23 }
 0x624   : > { %3895 = vmatprep.subr.msk.mxu0 %vm649_vm2, %v4900_v24 }
 0x627   : > { %3896 = vmatpush3.xpose.msk.msra.mxu0 %vm649_vm2, %v4900_v24 }
 0x628   : > { %3897 = vmatprep.subr.msk.mxu0 %vm649_vm2, %v4908_v25 }
 0x62b   : > { %3898 = vmatpush3.xpose.msk.msra.mxu0 %vm649_vm2, %v4908_v25 }
 0x62c   : > { %3899 = vmatprep.subr.msk.mxu0 %vm649_vm2, %v4916_v26 }
 0x62f   : > { %3900 = vmatpush3.xpose.msk.msra.mxu0 %vm649_vm2, %v4916_v26 }
 0x630   : > { %3901 = vmatprep.subr.msk.mxu0 %vm649_vm2, %v4924_v27 }
 0x633   : > { %3902 = vmatpush3.xpose.msk.msra.mxu0 %vm649_vm2, %v4924_v27 }
 0x634   : > { %3903 = vmatprep.subr.msk.mxu0 %vm649_vm2, %v4932_v28 }
 0x637   : > { %3904 = vmatpush3.xpose.msk.msra.mxu0 %vm649_vm2, %v4932_v28 }
 0x638   : > { %3905 = vmatprep.subr.msk.mxu0 %vm649_vm2, %v4940_v29 }
 0x63b   : > { %3906 = vmatpush3.xpose.msk.msra.mxu0 %vm649_vm2, %v4940_v29 }
 0x63c   : > { %3907 = vmatprep.subr.msk.mxu0 %vm649_vm2, %v4948_v30 }
 0x63f   : > { %3908 = vmatpush3.xpose.msk.msra.mxu0 %vm649_vm2, %v4948_v30 }
 0x640   : > { %3909 = vmatprep.subr.msk.mxu0 %vm649_vm2, %v4956_v31 }
 0x643   : > { %3910 = vmatpush3.xpose.msk.msra.mxu0 %vm649_vm2, %v4956_v31 }
 0x644   : > { %3911 = vmatprep.subr.msk.mxu0 %vm649_vm2, %v4964_v32 }
 0x647   : > { %3912 = vmatpush3.xpose.msk.msra.mxu0 %vm649_vm2, %v4964_v32 }
 0x648   : > { %3913 = vmatprep.subr.msk.mxu0 %vm649_vm2, %v4972_v33 }
 0x64b   : > { %3914 = vmatpush3.xpose.msk.msra.mxu0 %vm649_vm2, %v4972_v33 }
 0x64c   : > { %3915 = vmatprep.subr.msk.mxu0 %vm649_vm2, %v4980_v34 }
 0x64f   : > { %3916 = vmatpush3.xpose.msk.msra.mxu0 %vm649_vm2, %v4980_v34 }
 0x650   : > { %3917 = vmatprep.subr.msk.mxu0 %vm649_vm2, %v5013_v48 }
 0x653   : > { %3918 = vmatpush3.xpose.msk.msra.mxu0 %vm649_vm2, %v5013_v48 }
 0x654   : > { %3919 = vmatprep.subr.msk.mxu0 %vm649_vm2, %v5021_v49 }
 0x657   : > { %3920 = vmatpush3.xpose.msk.msra.mxu0 %vm649_vm2, %v5021_v49 }
 0x658   : > { %3999 = vmatprep.subr.mxu0 %v4986_v35 }
 0x65a   : > { %3922 = vmatmul.mubr.msk.f32.vlgmr.msra.gmra.mxu0 %vm649_vm2, %v1274_v39 }
 0x65b   : > { %4000 = vmatpush3.msra.mxu0 %v4986_v35 }
 0x65c   : > { %4001 = vmatprep.subr.mxu0 %v4990_v36 }
 0x65d   : > { %4002 = vmatpush3.msra.mxu0 %v4990_v36 }
 0x65e   : > { %4003 = vmatprep.subr.mxu0 %v4994_v37 }
 0x65f   : > { %4004 = vmatpush3.msra.mxu0 %v4994_v37 }
 0x660   : > { %4005 = vmatprep.subr.mxu0 %v4998_v38 }
 0x661   : > { %4006 = vmatpush3.msra.mxu0 %v4998_v38 }
 0x662   : > { %4007 = vmatprep.subr.mxu0 %v5062_v4 }
 0x663   : > { %4008 = vmatpush3.msra.mxu0 %v5062_v4 }
 0x664   : > { %4009 = vmatprep.subr.mxu0 %v5054_v59 }
 0x665   : > { %4010 = vmatpush3.msra.mxu0 %v5054_v59 }
 0x666   : > { %4011 = vmatprep.subr.mxu0 %v5056_v60 }
 0x667   : > { %4012 = vmatpush3.msra.mxu0 %v5056_v60 }
 0x668   : > { %4013 = vmatprep.subr.mxu0 %v5058_v61 }
 0x669   : > { %4014 = vmatpush3.msra.mxu0 %v5058_v61 }
 0x66a   : > { %4015 = vmatprep.subr.mxu0 %v5060_v0 }
 0x66b   : > { %4016 = vmatpush3.msra.mxu0 %v5060_v0 }
 0x66c   : > { %4017 = vmatprep.subr.mxu0 %v5068_v6 }
 0x66d   : > { %4018 = vmatpush3.msra.mxu0 %v5068_v6 }
 0x66e   : > { %4019 = vmatprep.subr.mxu0 %v5082_v7 }
 0x66f   : > { %4020 = vmatpush3.msra.mxu0 %v5082_v7 }
 0x670   : > { %4021 = vmatprep.subr.mxu0 %v5090_v8 }
 0x671   : > { %4022 = vmatpush3.msra.mxu0 %v5090_v8 }
 0x672   : > { %4023 = vmatprep.subr.mxu0 %v5098_v10 }
 0x673   : > { %4024 = vmatpush3.msra.mxu0 %v5098_v10 }
 0x674   : > { %4025 = vmatprep.subr.mxu0 %v5105_v11 }
 0x675   : > { %4026 = vmatpush3.msra.mxu0 %v5105_v11 }
 0x676   : > { %4027 = vmatprep.subr.mxu0 %v5112_v13 }
 0x677   : > { %4028 = vmatpush3.msra.mxu0 %v5112_v13 }
 0x678   : > { %4029 = vmatprep.subr.mxu0 %v5124_v16 }
 0x679   : > { %4030 = vmatpush3.msra.mxu0 %v5124_v16 }
 0x6da   : > { %v5349_v35 = vpop.f32.mrf.mxu0 }
 0x6db   : > { %v1268_v58 = vadd.f32 %v3888_v51, %v5349_v35 }
 0x6dc   : > { %v5351_v36 = vpop.f32.mrf.mxu0 }
 0x6dd   : > { %v1263_v63 = vadd.f32 %v1262_v52, %v5351_v36 }
 0x71a   : > { %v3923_v37 = vpop.f32.mrf.mxu0 }
 0x71b   : > { %v1355_v38 = vmul.f32 0.35355338, %v3923_v37 }
 0x71c   : > { %v1345_v59 = vpop.f32.mrf.mxu0 }
 0x71d   : > { %v1354_v60 = vmul.f32 0.35355338, %v1345_v59  ;;  %v1357_v61 = vsel %vm640_vm4, %v1355_v38, -1e+30 }
 0x71e   : > { %1360 = vmax.xlane.f32.xlu0 %v1357_v61 }
 0x71f   : > { %v1356_v0 = vsel %vm640_vm4, %v1354_v60, -1e+30 }
 0x720   : > { %1358 = vmax.xlane.f32.xlu1 %v1356_v0 }
 0x7a7   : > { %v1361_v4 = vpop.xlane.xlu0 %1360 }
 0x7a8   : > { %v1363_v6 = vsub.f32 %v1357_v61, %v1361_v4 }
 0x7a9   : > { %v1359_v7 = vpop.xlane.xlu1 %1358 }
 0x7aa   : > { %v1366_v8 = vmul.f32 1.442695, %v1363_v6  ;;  %v1362_v10 = vsub.f32 %v1356_v0, %v1359_v7 }
 0x7ac   : > { %4434 = vpow2.f32 %v1366_v8  ;;  %v1364_v11 = vmul.f32 1.442695, %v1362_v10 }
 0x7ae   : > { %4436 = vpow2.f32 %v1364_v11 }
 0x7b9   : > { %v4435_v13 = vpop.eup %4434 }
 0x7ba   : > { %1370 = vadd.xlane.f32.xlu1 %v4435_v13 }
 0x7bb   : > { %v4437_v16 = vpop.eup %4436 }
 0x7bc   : > { %1368 = vadd.xlane.f32.xlu0 %v4437_v16 }
 0x7cb   : > { %1539 = vrot.lane.b32.xlu1 %v5029_v50, %s4645_s29 }
 0x7d2   : > { %1537 = vrot.lane.b32.xlu0 %v5009_v47, %s4645_s29 }
 0x843   : > { %v1371_v41 = vpop.xlane.xlu1 %1370 }
 0x844   : > { %4438 = vrcp.f32 %v1371_v41 }
 0x845   : > { %v1369_v42 = vpop.xlane.xlu0 %1368 }
 0x846   : > { %4440 = vrcp.f32 %v1369_v42 }
 0x847   : > { %v1540_v57 = vpop.permute.xlu1 %1539 }
 0x849   : > { %v1538_v56 = vpop.permute.xlu0 %1537 }
 0x851   : > { %v4439_v43 = vpop.eup %4438 }
 0x852   : > { %v1375_v44 = vmul.f32 %v4439_v43, %v4435_v13 }
 0x853   : > { %v4441_v45 = vpop.eup %4440 }
 0x854   : > { %v1374_v46 = vmul.f32 %v4441_v45, %v4437_v16  ;;  %3243 = vst [vmem:[%s5133_s19 + $0x48] sm:$0xff] %v1375_v44 }
 0x856   : > { %3242 = vst [vmem:[%s5133_s19 + $0x40] sm:$0xff] %v1374_v46  ;;  %3956 = vmatprep.mubr.f32.mxu1 %v1374_v46 }
 0x857   : > { %3957 = vmatmul.mubr.f32.vlgmr.msra.gmra.mxu1 %v1375_v44 }
 0x858   : > { %3960 = vmatpush3.msra.mxu1 %v645_v40 }
 0x859   : > { %3964 = vmatprep.subr.msk.mxu1 %vm649_vm2, %v4878_v21 }
 0x917   : > { %v3958_v54 = vpop.f32.mrf.mxu1 }
 0x919   : > { %v1445_v55 = vpop.f32.mrf.mxu1 }
 0x91a   : > { %3961 = vmatprep.mubr.msk.f32.mxu1 %vm649_vm2, %v1445_v55  ;;  %v4483_v55 = vld [vmem:[#allocation2 + $0x78] sm:$0xff] }
 0x91b   : > { %3962 = vmatmul.mubr.msk.f32.vlgmr.msra.gmra.mxu1 %vm649_vm2, %v3958_v54  ;;  %v4482_v54 = vld [vmem:[#allocation2 + $0x70] sm:$0xff] }
 0x91c   : > { %3965 = vmatpush3.xpose.msk.msra.mxu1 %vm649_vm2, %v4878_v21  ;;  %3996 = vmatprep.mubr.msk.f32.mxu1 %vm649_vm2, %v1538_v56  ;;  %v4484_v56 = vld [vmem:[#allocation2 + $0x60] sm:$0xff] }
 0x91d   : > { %3966 = vmatprep.subr.msk.mxu1 %vm649_vm2, %v4881_v22 }
 0x920   : > { %3967 = vmatpush3.xpose.msk.msra.mxu1 %vm649_vm2, %v4881_v22 }
 0x921   : > { %3968 = vmatprep.subr.msk.mxu1 %vm649_vm2, %v4892_v23 }
 0x924   : > { %3969 = vmatpush3.xpose.msk.msra.mxu1 %vm649_vm2, %v4892_v23 }
 0x925   : > { %3970 = vmatprep.subr.msk.mxu1 %vm649_vm2, %v4900_v24 }
 0x928   : > { %3971 = vmatpush3.xpose.msk.msra.mxu1 %vm649_vm2, %v4900_v24 }
 0x929   : > { %3972 = vmatprep.subr.msk.mxu1 %vm649_vm2, %v4908_v25 }
 0x92c   : > { %3973 = vmatpush3.xpose.msk.msra.mxu1 %vm649_vm2, %v4908_v25 }
 0x92d   : > { %3974 = vmatprep.subr.msk.mxu1 %vm649_vm2, %v4916_v26 }
 0x930   : > { %3975 = vmatpush3.xpose.msk.msra.mxu1 %vm649_vm2, %v4916_v26 }
 0x931   : > { %3976 = vmatprep.subr.msk.mxu1 %vm649_vm2, %v4924_v27 }
 0x934   : > { %3977 = vmatpush3.xpose.msk.msra.mxu1 %vm649_vm2, %v4924_v27 }
 0x935   : > { %3978 = vmatprep.subr.msk.mxu1 %vm649_vm2, %v4932_v28 }
 0x938   : > { %3979 = vmatpush3.xpose.msk.msra.mxu1 %vm649_vm2, %v4932_v28 }
 0x939   : > { %3980 = vmatprep.subr.msk.mxu1 %vm649_vm2, %v4940_v29 }
 0x93c   : > { %3981 = vmatpush3.xpose.msk.msra.mxu1 %vm649_vm2, %v4940_v29 }
 0x93d   : > { %3982 = vmatprep.subr.msk.mxu1 %vm649_vm2, %v4948_v30 }
 0x940   : > { %3983 = vmatpush3.xpose.msk.msra.mxu1 %vm649_vm2, %v4948_v30 }
 0x941   : > { %3984 = vmatprep.subr.msk.mxu1 %vm649_vm2, %v4956_v31 }
 0x944   : > { %3985 = vmatpush3.xpose.msk.msra.mxu1 %vm649_vm2, %v4956_v31 }
 0x945   : > { %3986 = vmatprep.subr.msk.mxu1 %vm649_vm2, %v4964_v32 }
 0x948   : > { %3987 = vmatpush3.xpose.msk.msra.mxu1 %vm649_vm2, %v4964_v32 }
 0x949   : > { %3988 = vmatprep.subr.msk.mxu1 %vm649_vm2, %v4972_v33 }
 0x94c   : > { %3989 = vmatpush3.xpose.msk.msra.mxu1 %vm649_vm2, %v4972_v33 }
 0x94d   : > { %3990 = vmatprep.subr.msk.mxu1 %vm649_vm2, %v4980_v34 }
 0x950   : > { %3991 = vmatpush3.xpose.msk.msra.mxu1 %vm649_vm2, %v4980_v34 }
 0x951   : > { %3992 = vmatprep.subr.msk.mxu1 %vm649_vm2, %v5013_v48 }
 0x954   : > { %3993 = vmatpush3.xpose.msk.msra.mxu1 %vm649_vm2, %v5013_v48 }
 0x955   : > { %3994 = vmatprep.subr.msk.mxu1 %vm649_vm2, %v5021_v49 }
 0x958   : > { %3995 = vmatpush3.xpose.msk.msra.mxu1 %vm649_vm2, %v5021_v49 }
 0x95b   : > { %3997 = vmatmul.mubr.msk.f32.vlgmr.msra.gmra.mxu1 %vm649_vm2, %v1540_v57  ;;  %v4485_v57 = vld [vmem:[#allocation2 + $0x68] sm:$0xff] }
 0x9db   : > { %v3963_v62 = vpop.f32.mrf.mxu1 }
 0x9dc   : > { %v5434_v1 = vadd.f32 %v3963_v62, %v1268_v58  ;;  %v4486_v58 = vld [vmem:[#allocation2 + $0x58] sm:$0xff]  ;;  %v4487_v62 = vld [vmem:[#allocation2 + $0x50] sm:$0xff] }
 0x9dd   : > { %v1526_v2 = vpop.f32.mrf.mxu1 }
 0x9de   : > { %v5436_v3 = vadd.f32 %v1526_v2, %v1263_v63  ;;  %v4488_v63 = vld [vmem:[#allocation2 + $0x48] sm:$0xff]  ;;  %v4490_v2 = vld [vmem:[#allocation2 + $0x38] sm:$0xff] }
 0xa1b   : > { %v3998_v5 = vpop.f32.mrf.mxu1 }
 0xa1c   : > { %v1621_v9 = vmul.f32 0.35355338, %v3998_v5  ;;  %v4492_v5 = vld [vmem:[#allocation2 + $0x28] sm:$0xff] }
 0xa1d   : > { %v1611_v12 = vpop.f32.mrf.mxu1 }
 0xa1e   : > { %v1620_v14 = vmul.f32 0.35355338, %v1611_v12  ;;  %v1623_v15 = vsel %vm640_vm4, %v1621_v9, -1e+30  ;;  %v4493_v9 = vld [vmem:[#allocation2 + $0x20] sm:$0xff]  ;;  %v4494_v12 = vld [vmem:[#allocation2 + $0x18] sm:$0xff] }
 0xa1f   : > { %1626 = vmax.xlane.f32.xlu0 %v1623_v15 }
 0xa20   : > { %v1622_v17 = vsel %vm640_vm4, %v1620_v14, -1e+30  ;;  %v4495_v14 = vld [vmem:[#allocation2 + $0x10] sm:$0xff] }
 0xa21   : > { %1624 = vmax.xlane.f32.xlu1 %v1622_v17 }
 0xaa8   : > { %v1627_v18 = vpop.xlane.xlu0 %1626 }
 0xaa9   : > { %v1629_v19 = vsub.f32 %v1623_v15, %v1627_v18 }
 0xaaa   : > { %v1625_v20 = vpop.xlane.xlu1 %1624 }
 0xaab   : > { %v1632_v39 = vmul.f32 1.442695, %v1629_v19  ;;  %v1628_v35 = vsub.f32 %v1622_v17, %v1625_v20 }
 0xaad   : > { %4442 = vpow2.f32 %v1632_v39  ;;  %v1630_v36 = vmul.f32 1.442695, %v1628_v35 }
 0xaaf   : > { %4444 = vpow2.f32 %v1630_v36 }
 0xaba   : > { %v4443_v37 = vpop.eup %4442 }
 0xabb   : > { %1636 = vadd.xlane.f32.xlu1 %v4443_v37 }
 0xabc   : > { %v4445_v38 = vpop.eup %4444 }
 0xabd   : > { %1634 = vadd.xlane.f32.xlu0 %v4445_v38 }
 0xacc   : > { %1835 = vrot.lane.b32.xlu1 %v4881_v22, %s4643_s26 }
 0xad0   : > { %1833 = vrot.lane.b32.xlu1 %v4892_v23, %s4643_s26 }
 0xad3   : > { %1837 = vrot.lane.b32.xlu0 %v4878_v21, %s4643_s26  ;;  %v647_v21 = vld [vmem:[%s6146_s6 + $0x30] sm:$0xff] }
 0xad4   : > { %1829 = vrot.lane.b32.xlu1 %v4908_v25, %s4643_s26  ;;  %4034 = vmatprep.subr.mxu0 %v647_v21 }
 0xad7   : > { %1831 = vrot.lane.b32.xlu0 %v4900_v24, %s4643_s26 }
 0xad8   : > { %1825 = vrot.lane.b32.xlu1 %v4924_v27, %s4643_s26 }
 0xadb   : > { %1827 = vrot.lane.b32.xlu0 %v4916_v26, %s4643_s26 }
 0xadc   : > { %1821 = vrot.lane.b32.xlu1 %v4940_v29, %s4643_s26 }
 0xadf   : > { %1823 = vrot.lane.b32.xlu0 %v4932_v28, %s4643_s26 }
 0xae0   : > { %1817 = vrot.lane.b32.xlu1 %v4956_v31, %s4643_s26 }
 0xae3   : > { %1819 = vrot.lane.b32.xlu0 %v4948_v30, %s4643_s26 }
 0xae4   : > { %1813 = vrot.lane.b32.xlu1 %v4972_v33, %s4643_s26 }
 0xae7   : > { %1815 = vrot.lane.b32.xlu0 %v4964_v32, %s4643_s26 }
 0xae8   : > { %1809 = vrot.lane.b32.xlu1 %v5013_v48, %s4643_s26 }
 0xaeb   : > { %1811 = vrot.lane.b32.xlu0 %v4980_v34, %s4643_s26 }
 0xaec   : > { %1803 = vrot.lane.b32.xlu1 %v5009_v47, %s4642_s23 }
 0xaef   : > { %1807 = vrot.lane.b32.xlu0 %v5021_v49, %s4643_s26 }
 0xaf3   : > { %1805 = vrot.lane.b32.xlu0 %v5029_v50, %s4642_s23  ;;  %s4646_s23 = smov 104  }
 0xb44   : > { %v1637_v22 = vpop.xlane.xlu1 %1636 }
 0xb45   : > { %4446 = vrcp.f32 %v1637_v22 }
 0xb46   : > { %v1635_v23 = vpop.xlane.xlu0 %1634 }
 0xb47   : > { %4448 = vrcp.f32 %v1635_v23 }
 0xb48   : > { %v5487_v29 = vpop.permute.xlu1 %1835 }
 0xb4a   : > { %v5483_v28 = vpop.permute.xlu0 %1837 }
 0xb4c   : > { %v5489_v30 = vpop.permute.xlu1 %1833 }
 0xb4e   : > { %v5514_v0 = vpop.permute.xlu0 %1831 }
 0xb50   : > { %v5491_v31 = vpop.permute.xlu1 %1829 }
 0xb52   : > { %v4447_v24 = vpop.eup %4446  ;;  %v5524_v4 = vpop.permute.xlu0 %1827 }
 0xb53   : > { %v1641_v25 = vmul.f32 %v4447_v24, %v4443_v37 }
 0xb54   : > { %v4449_v26 = vpop.eup %4448  ;;  %v5493_v32 = vpop.permute.xlu1 %1825 }
 0xb55   : > { %v1640_v27 = vmul.f32 %v4449_v26, %v4445_v38  ;;  %3265 = vst [vmem:[%s5133_s19 + $0x68] sm:$0xff] %v1641_v25 }
 0xb56   : > { %v5534_v6 = vpop.permute.xlu0 %1823 }
 0xb57   : > { %3264 = vst [vmem:[%s5133_s19 + $0x60] sm:$0xff] %v1640_v27  ;;  %4031 = vmatprep.mubr.f32.mxu0 %v1640_v27 }
 0xb58   : > { %4032 = vmatmul.mubr.f32.vlgmr.msra.gmra.mxu0 %v1641_v25  ;;  %v5495_v33 = vpop.permute.xlu1 %1821 }
 0xb59   : > { %4035 = vmatpush3.msra.mxu0 %v647_v21 }
 0xb5a   : > { %4039 = vmatprep.subr.msk.mxu0 %vm649_vm2, %v5483_v28  ;;  %v5544_v7 = vpop.permute.xlu0 %1819 }
 0xb5c   : > { %v5497_v34 = vpop.permute.xlu1 %1817 }
 0xb5e   : > { %v5554_v8 = vpop.permute.xlu0 %1815 }
 0xb60   : > { %v5499_v48 = vpop.permute.xlu1 %1813 }
 0xb62   : > { %v5564_v10 = vpop.permute.xlu0 %1811 }
 0xb64   : > { %v5501_v49 = vpop.permute.xlu1 %1809 }
 0xb66   : > { %v5574_v11 = vpop.permute.xlu0 %1807 }
 0xb68   : > { %v1804_v61 = vpop.permute.xlu1 %1803 }
 0xb6a   : > { %v1806_v13 = vpop.permute.xlu0 %1805 }
 0xc18   : > { %v4033_v59 = vpop.f32.mrf.mxu0 }
 0xc1a   : > { %v1711_v60 = vpop.f32.mrf.mxu0 }
 0xc1b   : > { %4036 = vmatprep.mubr.msk.f32.mxu0 %vm649_vm2, %v1711_v60 }
 0xc1c   : > { %4037 = vmatmul.mubr.msk.f32.vlgmr.msra.gmra.mxu0 %vm649_vm2, %v4033_v59 }
 0xc1d   : > { %4040 = vmatpush3.xpose.msk.msra.mxu0 %vm649_vm2, %v5483_v28  ;;  %4071 = vmatprep.mubr.msk.f32.mxu0 %vm649_vm2, %v1804_v61 }
 0xc1e   : > { %4041 = vmatprep.subr.msk.mxu0 %vm649_vm2, %v5487_v29 }
 0xc21   : > { %4042 = vmatpush3.xpose.msk.msra.mxu0 %vm649_vm2, %v5487_v29 }
 0xc22   : > { %4043 = vmatprep.subr.msk.mxu0 %vm649_vm2, %v5489_v30 }
 0xc25   : > { %4044 = vmatpush3.xpose.msk.msra.mxu0 %vm649_vm2, %v5489_v30 }
 0xc26   : > { %4045 = vmatprep.subr.msk.mxu0 %vm649_vm2, %v5514_v0 }
 0xc29   : > { %4046 = vmatpush3.xpose.msk.msra.mxu0 %vm649_vm2, %v5514_v0 }
 0xc2a   : > { %4047 = vmatprep.subr.msk.mxu0 %vm649_vm2, %v5491_v31 }
 0xc2d   : > { %4048 = vmatpush3.xpose.msk.msra.mxu0 %vm649_vm2, %v5491_v31 }
 0xc2e   : > { %4049 = vmatprep.subr.msk.mxu0 %vm649_vm2, %v5524_v4 }
 0xc31   : > { %4050 = vmatpush3.xpose.msk.msra.mxu0 %vm649_vm2, %v5524_v4 }
 0xc32   : > { %4051 = vmatprep.subr.msk.mxu0 %vm649_vm2, %v5493_v32 }
 0xc35   : > { %4052 = vmatpush3.xpose.msk.msra.mxu0 %vm649_vm2, %v5493_v32 }
 0xc36   : > { %4053 = vmatprep.subr.msk.mxu0 %vm649_vm2, %v5534_v6 }
 0xc39   : > { %4054 = vmatpush3.xpose.msk.msra.mxu0 %vm649_vm2, %v5534_v6 }
 0xc3a   : > { %4055 = vmatprep.subr.msk.mxu0 %vm649_vm2, %v5495_v33 }
 0xc3d   : > { %4056 = vmatpush3.xpose.msk.msra.mxu0 %vm649_vm2, %v5495_v33 }
 0xc3e   : > { %4057 = vmatprep.subr.msk.mxu0 %vm649_vm2, %v5544_v7 }
 0xc41   : > { %4058 = vmatpush3.xpose.msk.msra.mxu0 %vm649_vm2, %v5544_v7 }
 0xc42   : > { %4059 = vmatprep.subr.msk.mxu0 %vm649_vm2, %v5497_v34 }
 0xc45   : > { %4060 = vmatpush3.xpose.msk.msra.mxu0 %vm649_vm2, %v5497_v34 }
 0xc46   : > { %4061 = vmatprep.subr.msk.mxu0 %vm649_vm2, %v5554_v8 }
 0xc49   : > { %4062 = vmatpush3.xpose.msk.msra.mxu0 %vm649_vm2, %v5554_v8 }
 0xc4a   : > { %4063 = vmatprep.subr.msk.mxu0 %vm649_vm2, %v5499_v48 }
 0xc4d   : > { %4064 = vmatpush3.xpose.msk.msra.mxu0 %vm649_vm2, %v5499_v48 }
 0xc4e   : > { %4065 = vmatprep.subr.msk.mxu0 %vm649_vm2, %v5564_v10 }
 0xc51   : > { %4066 = vmatpush3.xpose.msk.msra.mxu0 %vm649_vm2, %v5564_v10 }
 0xc52   : > { %4067 = vmatprep.subr.msk.mxu0 %vm649_vm2, %v5501_v49 }
 0xc55   : > { %4068 = vmatpush3.xpose.msk.msra.mxu0 %vm649_vm2, %v5501_v49 }
 0xc56   : > { %4069 = vmatprep.subr.msk.mxu0 %vm649_vm2, %v5574_v11 }
 0xc59   : > { %4070 = vmatpush3.xpose.msk.msra.mxu0 %vm649_vm2, %v5574_v11 }
 0xc5c   : > { %4072 = vmatmul.mubr.msk.f32.vlgmr.msra.gmra.mxu0 %vm649_vm2, %v1806_v13 }
 0xcdc   : > { %v4038_v16 = vpop.f32.mrf.mxu0 }
 0xcdd   : > { %v5584_v40 = vadd.f32 %v4038_v16, %v5434_v1  ;;  %v4489_v1 = vld [vmem:[#allocation2 + $0x40] sm:$0xff] }
 0xcde   : > { %v1792_v41 = vpop.f32.mrf.mxu0 }
 0xcdf   : > { %v5587_v42 = vadd.f32 %v1792_v41, %v5436_v3  ;;  %v4491_v3 = vld [vmem:[#allocation2 + $0x30] sm:$0xff]  ;;  %v4496_v41 = vld [vmem:[#allocation2 + $0x8] sm:$0xff] }
 0xd1c   : > { %v4073_v43 = vpop.f32.mrf.mxu0 }
 0xd1d   : > { %v1951_v44 = vmul.f32 0.35355338, %v4073_v43  ;;  %v4497_v43 = vld [vmem:[#allocation2] sm:$0xff] }
 0xd1e   : > { %v1941_v45 = vpop.f32.mrf.mxu0 }
 0xd1f   : > { %v1950_v46 = vmul.f32 0.35355338, %v1941_v45  ;;  %v1953_v51 = vsel %vm640_vm4, %v1951_v44, -1e+30 }
 0xd20   : > { %1956 = vmax.xlane.f32.xlu0 %v1953_v51 }
 0xd21   : > { %v1952_v52 = vsel %vm640_vm4, %v1950_v46, -1e+30 }
 0xd22   : > { %1954 = vmax.xlane.f32.xlu1 %v1952_v52 }
 0xd33   : > { %2003 = vrot.lane.b32.xlu1 %v4482_v54, %s4646_s23 }
 0xd36   : > { %2005 = vrot.lane.b32.xlu0 %v4483_v55, %s4646_s23 }
 0xd37   : > { %1999 = vrot.lane.b32.xlu1 %v4484_v56, %s4646_s23 }
 0xd3a   : > { %2001 = vrot.lane.b32.xlu0 %v4485_v57, %s4646_s23 }
 0xd3b   : > { %1997 = vrot.lane.b32.xlu1 %v4486_v58, %s4646_s23 }
 0xd3e   : > { %1995 = vrot.lane.b32.xlu0 %v4487_v62, %s4646_s23 }
 0xd3f   : > { %1993 = vrot.lane.b32.xlu1 %v4488_v63, %s4646_s23 }
 0xd42   : > { %1991 = vrot.lane.b32.xlu0 %v4489_v1, %s4646_s23 }
 0xd43   : > { %1989 = vrot.lane.b32.xlu1 %v4490_v2, %s4646_s23 }
 0xd46   : > { %1987 = vrot.lane.b32.xlu0 %v4491_v3, %s4646_s23 }
 0xd47   : > { %1985 = vrot.lane.b32.xlu1 %v4492_v5, %s4646_s23 }
 0xd4a   : > { %1983 = vrot.lane.b32.xlu0 %v4493_v9, %s4646_s23 }
 0xd4b   : > { %1981 = vrot.lane.b32.xlu1 %v4494_v12, %s4646_s23 }
 0xd4e   : > { %1979 = vrot.lane.b32.xlu0 %v4495_v14, %s4646_s23 }
 0xda9   : > { %v1957_v15 = vpop.xlane.xlu0 %1956 }
 0xdaa   : > { %v1959_v17 = vsub.f32 %v1953_v51, %v1957_v15 }
 0xdab   : > { %v1955_v18 = vpop.xlane.xlu1 %1954 }
 0xdac   : > { %v1962_v19 = vmul.f32 1.442695, %v1959_v17  ;;  %v1958_v20 = vsub.f32 %v1952_v52, %v1955_v18  ;;  %v642_v52 = vld [vmem:[%s6146_s6 + $0x8] sm:$0xff] }
 0xdad   : > { %v5607_v39 = vpop.permute.xlu0 %2005 }
 0xdae   : > { %4450 = vpow2.f32 %v1962_v19  ;;  %v1960_v35 = vmul.f32 1.442695, %v1958_v20  ;;  %4074 = vmatprep.subr.mxu1 %v5607_v39  ;;  %4149 = vmatprep.subr.mxu0 %v5607_v39 }
 0xdaf   : > { %4075 = vmatpush3.msra.mxu1 %v5607_v39  ;;  %4150 = vmatpush3.msra.mxu0 %v5607_v39  ;;  %v5613_v36 = vpop.permute.xlu1 %2003 }
 0xdb0   : > { %4452 = vpow2.f32 %v1960_v35  ;;  %4076 = vmatprep.subr.mxu1 %v5613_v36  ;;  %4151 = vmatprep.subr.mxu0 %v5613_v36 }
 0xdb1   : > { %v5617_v37 = vpop.permute.xlu0 %2001  ;;  %4077 = vmatpush3.msra.mxu1 %v5613_v36  ;;  %4152 = vmatpush3.msra.mxu0 %v5613_v36 }
 0xdb2   : > { %4078 = vmatprep.subr.mxu1 %v5617_v37  ;;  %4153 = vmatprep.subr.mxu0 %v5617_v37 }
 0xdb3   : > { %4079 = vmatpush3.msra.mxu1 %v5617_v37  ;;  %4154 = vmatpush3.msra.mxu0 %v5617_v37  ;;  %v5625_v38 = vpop.permute.xlu1 %1999 }
 0xdb4   : > { %4080 = vmatprep.subr.mxu1 %v5625_v38  ;;  %4155 = vmatprep.subr.mxu0 %v5625_v38 }
 0xdb5   : > { %4081 = vmatpush3.msra.mxu1 %v5625_v38  ;;  %4156 = vmatpush3.msra.mxu0 %v5625_v38  ;;  %v5631_v21 = vpop.permute.xlu0 %1995 }
 0xdb7   : > { %v5633_v22 = vpop.permute.xlu1 %1997 }
 0xdb8   : > { %4082 = vmatprep.subr.mxu1 %v5633_v22  ;;  %4157 = vmatprep.subr.mxu0 %v5633_v22 }
 0xdb9   : > { %4083 = vmatpush3.msra.mxu1 %v5633_v22  ;;  %4158 = vmatpush3.msra.mxu0 %v5633_v22  ;;  %v5639_v23 = vpop.permute.xlu0 %1991 }
 0xdba   : > { %4084 = vmatprep.subr.mxu1 %v5631_v21  ;;  %4159 = vmatprep.subr.mxu0 %v5631_v21 }
 0xdbb   : > { %v5643_v24 = vpop.eup %4450  ;;  %4085 = vmatpush3.msra.mxu1 %v5631_v21  ;;  %4160 = vmatpush3.msra.mxu0 %v5631_v21  ;;  %v5647_v25 = vpop.permute.xlu1 %1993 }
 0xdbc   : > { %1966 = vadd.xlane.f32.xlu0 %v5643_v24  ;;  %4086 = vmatprep.subr.mxu1 %v5647_v25 }
 0xdbd   : > { %v5651_v26 = vpop.eup %4452  ;;  %4161 = vmatprep.subr.mxu0 %v5647_v25  ;;  %4087 = vmatpush3.msra.mxu1 %v5647_v25  ;;  %v5657_v27 = vpop.permute.xlu0 %1987 }
 0xdbe   : > { %1964 = vadd.xlane.f32.xlu1 %v5651_v26  ;;  %4162 = vmatpush3.msra.mxu0 %v5647_v25 }
 0xdbf   : > { %4088 = vmatprep.subr.mxu1 %v5639_v23  ;;  %4163 = vmatprep.subr.mxu0 %v5639_v23  ;;  %v5661_v59 = vpop.permute.xlu1 %1989 }
 0xdc0   : > { %4089 = vmatpush3.msra.mxu1 %v5639_v23  ;;  %4164 = vmatpush3.msra.mxu0 %v5639_v23 }
 0xdc1   : > { %4090 = vmatprep.subr.mxu1 %v5661_v59  ;;  %4165 = vmatprep.subr.mxu0 %v5661_v59  ;;  %v5675_v61 = vpop.permute.xlu0 %1983 }
 0xdc2   : > { %4091 = vmatpush3.msra.mxu1 %v5661_v59  ;;  %4166 = vmatpush3.msra.mxu0 %v5661_v59 }
 0xdc3   : > { %4092 = vmatprep.subr.mxu1 %v5657_v27  ;;  %4167 = vmatprep.subr.mxu0 %v5657_v27  ;;  %v5671_v60 = vpop.permute.xlu1 %1985 }
 0xdc4   : > { %4093 = vmatpush3.msra.mxu1 %v5657_v27  ;;  %4168 = vmatpush3.msra.mxu0 %v5657_v27 }
 0xdc5   : > { %4094 = vmatprep.subr.mxu1 %v5671_v60  ;;  %4169 = vmatprep.subr.mxu0 %v5671_v60  ;;  %v5687_v16 = vpop.permute.xlu0 %1979 }
 0xdc6   : > { %4095 = vmatpush3.msra.mxu1 %v5671_v60  ;;  %4170 = vmatpush3.msra.mxu0 %v5671_v60 }
 0xdc7   : > { %4096 = vmatprep.subr.mxu1 %v5675_v61  ;;  %4171 = vmatprep.subr.mxu0 %v5675_v61  ;;  %v5683_v13 = vpop.permute.xlu1 %1981 }
 0xdc8   : > { %4097 = vmatpush3.msra.mxu1 %v5675_v61  ;;  %4172 = vmatpush3.msra.mxu0 %v5675_v61 }
 0xdc9   : > { %4098 = vmatprep.subr.mxu1 %v5683_v13  ;;  %4173 = vmatprep.subr.mxu0 %v5683_v13 }
 0xdca   : > { %4099 = vmatpush3.msra.mxu1 %v5683_v13  ;;  %4174 = vmatpush3.msra.mxu0 %v5683_v13 }
 0xdcb   : > { %4100 = vmatprep.subr.mxu1 %v5687_v16  ;;  %4175 = vmatprep.subr.mxu0 %v5687_v16 }
 0xdcc   : > { %4101 = vmatpush3.msra.mxu1 %v5687_v16  ;;  %4176 = vmatpush3.msra.mxu0 %v5687_v16 }
 0xdcf   : > { %1977 = vrot.lane.b32.xlu1 %v4496_v41, %s4646_s23 }
 0xdd2   : > { %1975 = vrot.lane.b32.xlu0 %v4497_v43, %s4646_s23 }
 0xdd3   : > { %2181 = vrot.lane.b32.xlu1 %v5009_v47, %s4646_s23 }
 0xdd6   : > { %2183 = vrot.lane.b32.xlu0 %v5029_v50, %s4646_s23  ;;  %s3029_s23 = sshll.u32 %s5133_s19, 4  ;;  %s6048_s23 = int_to_ptr.vmem [resolvable:$true] %s3029_s23 }
 0xdd7   : > { %s4526_s15 = scalar_lea.vmem %s6048_s23, 2048 }
 0xdd8   : > { %p4527_p8 = scmp.ne.s32.totalorder %s6048_s23, %s4526_s15 }
 0xdda   : > { %p4528_p0 = pnand %p4527_p8, %p4754_p9 }
 0xddc   : > { %p4529_p1 = pneg %p4528_p0 }
 0xe45   : > { %v1967_v44 = vpop.xlane.xlu0 %1966 }
 0xe46   : > { %4454 = vrcp.f32 %v1967_v44  ;;  %v644_v44 = vld [vmem:[%s6146_s6 + $0x18] sm:$0xff] }
 0xe47   : > { %v1965_v45 = vpop.xlane.xlu1 %1964 }
 0xe48   : > { %4456 = vrcp.f32 %v1965_v45 }
 0xe49   : > { %v5707_v51 = vpop.permute.xlu0 %1975 }
 0xe4b   : > { %v5703_v46 = vpop.permute.xlu1 %1977 }
 0xe4c   : > { %4102 = vmatprep.subr.mxu1 %v5703_v46  ;;  %4177 = vmatprep.subr.mxu0 %v5703_v46 }
 0xe4d   : > { %4103 = vmatpush3.msra.mxu1 %v5703_v46  ;;  %4178 = vmatpush3.msra.mxu0 %v5703_v46  ;;  %v2184_v1 = vpop.permute.xlu0 %2183 }
 0xe4e   : > { %4104 = vmatprep.subr.mxu1 %v5707_v51  ;;  %4179 = vmatprep.subr.mxu0 %v5707_v51 }
 0xe4f   : > { %4105 = vmatpush3.msra.mxu1 %v5707_v51  ;;  %4180 = vmatpush3.msra.mxu0 %v5707_v51  ;;  %v2182_v63 = vpop.permute.xlu1 %2181 }
 0xe50   : > { %4109 = vmatprep.subr.mxu1 %v642_v52  ;;  %4184 = vmatprep.subr.mxu0 %v644_v44 }
 0xe53   : > { %v4455_v54 = vpop.eup %4454 }
 0xe54   : > { %v1971_v55 = vmul.f32 %v4455_v54, %v5643_v24 }
 0xe55   : > { %v4457_v56 = vpop.eup %4456 }
 0xe56   : > { %v1970_v57 = vmul.f32 %v4457_v56, %v5651_v26  ;;  %3287 = vst [vmem:[%s5133_s19 + $0x18] sm:$0xff] %v1971_v55 }
 0xe58   : > { %3286 = vst [vmem:[%s5133_s19 + $0x10] sm:$0xff] %v1970_v57  ;;  %4106 = vmatprep.mubr.f32.mxu1 %v1970_v57 }
 0xe59   : > { %4107 = vmatmul.mubr.f32.vlgmr.msra.gmra.mxu1 %v1971_v55 }
 0xe5a   : > { %4110 = vmatpush3.msra.mxu1 %v642_v52 }
 0xe5b   : > { %4114 = vmatprep.subr.msk.mxu1 %vm649_vm2, %v5483_v28 }
 0xf19   : > { %v4108_v58 = vpop.f32.mrf.mxu1 }
 0xf1b   : > { %v2089_v62 = vpop.f32.mrf.mxu1 }
 0xf1c   : > { %4111 = vmatprep.mubr.msk.f32.mxu1 %vm649_vm2, %v2089_v62 }
 0xf1d   : > { %4112 = vmatmul.mubr.msk.f32.vlgmr.msra.gmra.mxu1 %vm649_vm2, %v4108_v58 }
 0xf1e   : > { %4115 = vmatpush3.xpose.msk.msra.mxu1 %vm649_vm2, %v5483_v28  ;;  %4146 = vmatprep.mubr.msk.f32.mxu1 %vm649_vm2, %v2182_v63 }
 0xf1f   : > { %4116 = vmatprep.subr.msk.mxu1 %vm649_vm2, %v5487_v29 }
 0xf22   : > { %4117 = vmatpush3.xpose.msk.msra.mxu1 %vm649_vm2, %v5487_v29 }
 0xf23   : > { %4118 = vmatprep.subr.msk.mxu1 %vm649_vm2, %v5489_v30 }
 0xf26   : > { %4119 = vmatpush3.xpose.msk.msra.mxu1 %vm649_vm2, %v5489_v30 }
 0xf27   : > { %4120 = vmatprep.subr.msk.mxu1 %vm649_vm2, %v5514_v0 }
 0xf2a   : > { %4121 = vmatpush3.xpose.msk.msra.mxu1 %vm649_vm2, %v5514_v0 }
 0xf2b   : > { %4122 = vmatprep.subr.msk.mxu1 %vm649_vm2, %v5491_v31 }
 0xf2e   : > { %4123 = vmatpush3.xpose.msk.msra.mxu1 %vm649_vm2, %v5491_v31 }
 0xf2f   : > { %4124 = vmatprep.subr.msk.mxu1 %vm649_vm2, %v5524_v4 }
 0xf32   : > { %4125 = vmatpush3.xpose.msk.msra.mxu1 %vm649_vm2, %v5524_v4 }
 0xf33   : > { %4126 = vmatprep.subr.msk.mxu1 %vm649_vm2, %v5493_v32 }
 0xf36   : > { %4127 = vmatpush3.xpose.msk.msra.mxu1 %vm649_vm2, %v5493_v32 }
 0xf37   : > { %4128 = vmatprep.subr.msk.mxu1 %vm649_vm2, %v5534_v6 }
 0xf3a   : > { %4129 = vmatpush3.xpose.msk.msra.mxu1 %vm649_vm2, %v5534_v6 }
 0xf3b   : > { %4130 = vmatprep.subr.msk.mxu1 %vm649_vm2, %v5495_v33 }
 0xf3e   : > { %4131 = vmatpush3.xpose.msk.msra.mxu1 %vm649_vm2, %v5495_v33 }
 0xf3f   : > { %4132 = vmatprep.subr.msk.mxu1 %vm649_vm2, %v5544_v7 }
 0xf42   : > { %4133 = vmatpush3.xpose.msk.msra.mxu1 %vm649_vm2, %v5544_v7 }
 0xf43   : > { %4134 = vmatprep.subr.msk.mxu1 %vm649_vm2, %v5497_v34 }
 0xf46   : > { %4135 = vmatpush3.xpose.msk.msra.mxu1 %vm649_vm2, %v5497_v34 }
 0xf47   : > { %4136 = vmatprep.subr.msk.mxu1 %vm649_vm2, %v5554_v8 }
 0xf4a   : > { %4137 = vmatpush3.xpose.msk.msra.mxu1 %vm649_vm2, %v5554_v8 }
 0xf4b   : > { %4138 = vmatprep.subr.msk.mxu1 %vm649_vm2, %v5499_v48 }
 0xf4e   : > { %4139 = vmatpush3.xpose.msk.msra.mxu1 %vm649_vm2, %v5499_v48 }
 0xf4f   : > { %4140 = vmatprep.subr.msk.mxu1 %vm649_vm2, %v5564_v10 }
 0xf52   : > { %4141 = vmatpush3.xpose.msk.msra.mxu1 %vm649_vm2, %v5564_v10 }
 0xf53   : > { %4142 = vmatprep.subr.msk.mxu1 %vm649_vm2, %v5501_v49 }
 0xf56   : > { %4143 = vmatpush3.xpose.msk.msra.mxu1 %vm649_vm2, %v5501_v49 }
 0xf57   : > { %4144 = vmatprep.subr.msk.mxu1 %vm649_vm2, %v5574_v11 }
 0xf5a   : > { %4145 = vmatpush3.xpose.msk.msra.mxu1 %vm649_vm2, %v5574_v11 }
 0xf5b   : > { %4224 = vmatprep.subr.mxu1 %v5607_v39 }
 0xf5d   : > { %4147 = vmatmul.mubr.msk.f32.vlgmr.msra.gmra.mxu1 %vm649_vm2, %v2184_v1 }
 0xf5e   : > { %4225 = vmatpush3.msra.mxu1 %v5607_v39 }
 0xf5f   : > { %4226 = vmatprep.subr.mxu1 %v5613_v36 }
 0xf60   : > { %4227 = vmatpush3.msra.mxu1 %v5613_v36 }
 0xf61   : > { %4228 = vmatprep.subr.mxu1 %v5617_v37 }
 0xf62   : > { %4229 = vmatpush3.msra.mxu1 %v5617_v37 }
 0xf63   : > { %4230 = vmatprep.subr.mxu1 %v5625_v38 }
 0xf64   : > { %4231 = vmatpush3.msra.mxu1 %v5625_v38 }
 0xf65   : > { %4232 = vmatprep.subr.mxu1 %v5633_v22 }
 0xf66   : > { %4233 = vmatpush3.msra.mxu1 %v5633_v22 }
 0xf67   : > { %4234 = vmatprep.subr.mxu1 %v5631_v21 }
 0xf68   : > { %4235 = vmatpush3.msra.mxu1 %v5631_v21 }
 0xf69   : > { %4236 = vmatprep.subr.mxu1 %v5647_v25 }
 0xf6a   : > { %4237 = vmatpush3.msra.mxu1 %v5647_v25 }
 0xf6b   : > { %4238 = vmatprep.subr.mxu1 %v5639_v23 }
 0xf6c   : > { %4239 = vmatpush3.msra.mxu1 %v5639_v23 }
 0xf6d   : > { %4240 = vmatprep.subr.mxu1 %v5661_v59 }
 0xf6e   : > { %4241 = vmatpush3.msra.mxu1 %v5661_v59 }
 0xf6f   : > { %4242 = vmatprep.subr.mxu1 %v5657_v27 }
 0xf70   : > { %4243 = vmatpush3.msra.mxu1 %v5657_v27 }
 0xf71   : > { %4244 = vmatprep.subr.mxu1 %v5671_v60 }
 0xf72   : > { %4245 = vmatpush3.msra.mxu1 %v5671_v60 }
 0xf73   : > { %4246 = vmatprep.subr.mxu1 %v5675_v61 }
 0xf74   : > { %4247 = vmatpush3.msra.mxu1 %v5675_v61 }
 0xf75   : > { %4248 = vmatprep.subr.mxu1 %v5683_v13 }
 0xf76   : > { %4249 = vmatpush3.msra.mxu1 %v5683_v13 }
 0xf77   : > { %4250 = vmatprep.subr.mxu1 %v5687_v16 }
 0xf78   : > { %4251 = vmatpush3.msra.mxu1 %v5687_v16 }
 0xf79   : > { %4252 = vmatprep.subr.mxu1 %v5703_v46 }
 0xf7a   : > { %4253 = vmatpush3.msra.mxu1 %v5703_v46 }
 0xf7b   : > { %4254 = vmatprep.subr.mxu1 %v5707_v51 }
 0xf7c   : > { %4255 = vmatpush3.msra.mxu1 %v5707_v51 }
 0xfdd   : > { %v4113_v2 = vpop.f32.mrf.mxu1 }
 0xfde   : > { %v5823_v3 = vadd.f32 %v4113_v2, %v5584_v40 }
 0xfdf   : > { %v2170_v5 = vpop.f32.mrf.mxu1 }
 0xfe0   : > { %v5826_v9 = vadd.f32 %v2170_v5, %v5587_v42  ;;  %v646_v5 = vld [vmem:[%s6146_s6 + $0x28] sm:$0xff] }
 0xfe1   : > { %4259 = vmatprep.subr.mxu1 %v646_v5 }
0x101d   : > { %v4148_v12 = vpop.f32.mrf.mxu1 }
0x101e   : > { %v2265_v14 = vmul.f32 0.35355338, %v4148_v12 }
0x101f   : > { %v2255_v15 = vpop.f32.mrf.mxu1 }
0x1020   : > { %v2264_v17 = vmul.f32 0.35355338, %v2255_v15  ;;  %v2267_v18 = vsel %vm640_vm4, %v2265_v14, -1e+30 }
0x1021   : > { %2270 = vmax.xlane.f32.xlu0 %v2267_v18 }
0x1022   : > { %v2266_v19 = vsel %vm640_vm4, %v2264_v17, -1e+30 }
0x1023   : > { %2268 = vmax.xlane.f32.xlu1 %v2266_v19 }
0x10aa   : > { %v2271_v20 = vpop.xlane.xlu0 %2270 }
0x10ab   : > { %v2273_v35 = vsub.f32 %v2267_v18, %v2271_v20 }
0x10ac   : > { %v2269_v40 = vpop.xlane.xlu1 %2268 }
0x10ad   : > { %v2276_v24 = vmul.f32 1.442695, %v2273_v35  ;;  %v2272_v26 = vsub.f32 %v2266_v19, %v2269_v40 }
0x10af   : > { %4458 = vpow2.f32 %v2276_v24  ;;  %v2274_v42 = vmul.f32 1.442695, %v2272_v26 }
0x10b1   : > { %4460 = vpow2.f32 %v2274_v42 }
0x10bc   : > { %v4459_v41 = vpop.eup %4458 }
0x10bd   : > { %2280 = vadd.xlane.f32.xlu1 %v4459_v41 }
0x10be   : > { %v4461_v43 = vpop.eup %4460 }
0x10bf   : > { %2278 = vadd.xlane.f32.xlu0 %v4461_v43 }
0x10ce   : > { %2449 = vrot.lane.b32.xlu1 %v5029_v50, %s4647_s27 }
0x10d5   : > { %2447 = vrot.lane.b32.xlu0 %v5009_v47, %s4647_s27  ;;  %s6046_s27 = scalar_lea.hbm %s6149_s9, %s3368_s21 }
0x1146   : > { %v2281_v45 = vpop.xlane.xlu1 %2280 }
0x1147   : > { %4462 = vrcp.f32 %v2281_v45 }
0x1148   : > { %v2279_v52 = vpop.xlane.xlu0 %2278 }
0x1149   : > { %4464 = vrcp.f32 %v2279_v52 }
0x114a   : > { %v2450_v1 = vpop.permute.xlu1 %2449 }
0x114c   : > { %v2448_v63 = vpop.permute.xlu0 %2447 }
0x1154   : > { %v4463_v54 = vpop.eup %4462 }
0x1155   : > { %v2285_v55 = vmul.f32 %v4463_v54, %v4459_v41 }
0x1156   : > { %v4465_v56 = vpop.eup %4464 }
0x1157   : > { %v2284_v57 = vmul.f32 %v4465_v56, %v4461_v43  ;;  %3309 = vst [vmem:[%s5133_s19 + $0x38] sm:$0xff] %v2285_v55 }
0x1159   : > { %3308 = vst [vmem:[%s5133_s19 + $0x30] sm:$0xff] %v2284_v57  ;;  %4181 = vmatprep.mubr.f32.mxu0 %v2284_v57 }
0x115a   : > { %4182 = vmatmul.mubr.f32.vlgmr.msra.gmra.mxu0 %v2285_v55 }
0x115b   : > { %4185 = vmatpush3.msra.mxu0 %v644_v44 }
0x115c   : > { %4189 = vmatprep.subr.msk.mxu0 %vm649_vm2, %v5483_v28 }
0x121a   : > { %v4183_v58 = vpop.f32.mrf.mxu0 }
0x121c   : > { %v2355_v62 = vpop.f32.mrf.mxu0 }
0x121d   : > { %4186 = vmatprep.mubr.msk.f32.mxu0 %vm649_vm2, %v2355_v62 }
0x121e   : > { %4187 = vmatmul.mubr.msk.f32.vlgmr.msra.gmra.mxu0 %vm649_vm2, %v4183_v58 }
0x121f   : > { %4190 = vmatpush3.xpose.msk.msra.mxu0 %vm649_vm2, %v5483_v28  ;;  %4221 = vmatprep.mubr.msk.f32.mxu0 %vm649_vm2, %v2448_v63 }
0x1220   : > { %4191 = vmatprep.subr.msk.mxu0 %vm649_vm2, %v5487_v29 }
0x1223   : > { %4192 = vmatpush3.xpose.msk.msra.mxu0 %vm649_vm2, %v5487_v29 }
0x1224   : > { %4193 = vmatprep.subr.msk.mxu0 %vm649_vm2, %v5489_v30 }
0x1227   : > { %4194 = vmatpush3.xpose.msk.msra.mxu0 %vm649_vm2, %v5489_v30 }
0x1228   : > { %4195 = vmatprep.subr.msk.mxu0 %vm649_vm2, %v5514_v0 }
0x122b   : > { %4196 = vmatpush3.xpose.msk.msra.mxu0 %vm649_vm2, %v5514_v0 }
0x122c   : > { %4197 = vmatprep.subr.msk.mxu0 %vm649_vm2, %v5491_v31 }
0x122f   : > { %4198 = vmatpush3.xpose.msk.msra.mxu0 %vm649_vm2, %v5491_v31 }
0x1230   : > { %4199 = vmatprep.subr.msk.mxu0 %vm649_vm2, %v5524_v4 }
0x1233   : > { %4200 = vmatpush3.xpose.msk.msra.mxu0 %vm649_vm2, %v5524_v4 }
0x1234   : > { %4201 = vmatprep.subr.msk.mxu0 %vm649_vm2, %v5493_v32 }
0x1237   : > { %4202 = vmatpush3.xpose.msk.msra.mxu0 %vm649_vm2, %v5493_v32 }
0x1238   : > { %4203 = vmatprep.subr.msk.mxu0 %vm649_vm2, %v5534_v6 }
0x123b   : > { %4204 = vmatpush3.xpose.msk.msra.mxu0 %vm649_vm2, %v5534_v6 }
0x123c   : > { %4205 = vmatprep.subr.msk.mxu0 %vm649_vm2, %v5495_v33 }
0x123f   : > { %4206 = vmatpush3.xpose.msk.msra.mxu0 %vm649_vm2, %v5495_v33 }
0x1240   : > { %4207 = vmatprep.subr.msk.mxu0 %vm649_vm2, %v5544_v7 }
0x1243   : > { %4208 = vmatpush3.xpose.msk.msra.mxu0 %vm649_vm2, %v5544_v7 }
0x1244   : > { %4209 = vmatprep.subr.msk.mxu0 %vm649_vm2, %v5497_v34 }
0x1247   : > { %4210 = vmatpush3.xpose.msk.msra.mxu0 %vm649_vm2, %v5497_v34 }
0x1248   : > { %4211 = vmatprep.subr.msk.mxu0 %vm649_vm2, %v5554_v8 }
0x124b   : > { %4212 = vmatpush3.xpose.msk.msra.mxu0 %vm649_vm2, %v5554_v8 }
0x124c   : > { %4213 = vmatprep.subr.msk.mxu0 %vm649_vm2, %v5499_v48 }
0x124f   : > { %4214 = vmatpush3.xpose.msk.msra.mxu0 %vm649_vm2, %v5499_v48 }
0x1250   : > { %4215 = vmatprep.subr.msk.mxu0 %vm649_vm2, %v5564_v10 }
0x1253   : > { %4216 = vmatpush3.xpose.msk.msra.mxu0 %vm649_vm2, %v5564_v10 }
0x1254   : > { %4217 = vmatprep.subr.msk.mxu0 %vm649_vm2, %v5501_v49 }
0x1257   : > { %4218 = vmatpush3.xpose.msk.msra.mxu0 %vm649_vm2, %v5501_v49 }
0x1258   : > { %4219 = vmatprep.subr.msk.mxu0 %vm649_vm2, %v5574_v11 }
0x125b   : > { %4220 = vmatpush3.xpose.msk.msra.mxu0 %vm649_vm2, %v5574_v11 }
0x125c   : > { %4299 = vmatprep.subr.mxu0 %v5607_v39 }
0x125e   : > { %4222 = vmatmul.mubr.msk.f32.vlgmr.msra.gmra.mxu0 %vm649_vm2, %v2450_v1 }
0x125f   : > { %4300 = vmatpush3.msra.mxu0 %v5607_v39 }
0x1260   : > { %4301 = vmatprep.subr.mxu0 %v5613_v36 }
0x1261   : > { %4302 = vmatpush3.msra.mxu0 %v5613_v36 }
0x1262   : > { %4303 = vmatprep.subr.mxu0 %v5617_v37 }
0x1263   : > { %4304 = vmatpush3.msra.mxu0 %v5617_v37 }
0x1264   : > { %4305 = vmatprep.subr.mxu0 %v5625_v38 }
0x1265   : > { %4306 = vmatpush3.msra.mxu0 %v5625_v38 }
0x1266   : > { %4307 = vmatprep.subr.mxu0 %v5633_v22 }
0x1267   : > { %4308 = vmatpush3.msra.mxu0 %v5633_v22 }
0x1268   : > { %4309 = vmatprep.subr.mxu0 %v5631_v21 }
0x1269   : > { %4310 = vmatpush3.msra.mxu0 %v5631_v21 }
0x126a   : > { %4311 = vmatprep.subr.mxu0 %v5647_v25 }
0x126b   : > { %4312 = vmatpush3.msra.mxu0 %v5647_v25 }
0x126c   : > { %4313 = vmatprep.subr.mxu0 %v5639_v23 }
0x126d   : > { %4314 = vmatpush3.msra.mxu0 %v5639_v23 }
0x126e   : > { %4315 = vmatprep.subr.mxu0 %v5661_v59 }
0x126f   : > { %4316 = vmatpush3.msra.mxu0 %v5661_v59 }
0x1270   : > { %4317 = vmatprep.subr.mxu0 %v5657_v27 }
0x1271   : > { %4318 = vmatpush3.msra.mxu0 %v5657_v27 }
0x1272   : > { %4319 = vmatprep.subr.mxu0 %v5671_v60 }
0x1273   : > { %4320 = vmatpush3.msra.mxu0 %v5671_v60 }
0x1274   : > { %4321 = vmatprep.subr.mxu0 %v5675_v61 }
0x1275   : > { %4322 = vmatpush3.msra.mxu0 %v5675_v61 }
0x1276   : > { %4323 = vmatprep.subr.mxu0 %v5683_v13 }
0x1277   : > { %4324 = vmatpush3.msra.mxu0 %v5683_v13 }
0x1278   : > { %4325 = vmatprep.subr.mxu0 %v5687_v16 }
0x1279   : > { %4326 = vmatpush3.msra.mxu0 %v5687_v16 }
0x127a   : > { %4327 = vmatprep.subr.mxu0 %v5703_v46 }
0x127b   : > { %4328 = vmatpush3.msra.mxu0 %v5703_v46 }
0x127c   : > { %4329 = vmatprep.subr.mxu0 %v5707_v51 }
0x127d   : > { %4330 = vmatpush3.msra.mxu0 %v5707_v51 }
0x127e   : > { %4334 = vmatprep.subr.mxu0 %v648_v53 }
0x12de   : > { %v4188_v39 = vpop.f32.mrf.mxu0 }
0x12df   : > { %v5940_v36 = vadd.f32 %v4188_v39, %v5823_v3 }
0x12e0   : > { %v2436_v37 = vpop.f32.mrf.mxu0 }
0x12e1   : > { %v5943_v38 = vadd.f32 %v2436_v37, %v5826_v9 }
0x131e   : > { %v4223_v21 = vpop.f32.mrf.mxu0 }
0x131f   : > { %v2531_v22 = vmul.f32 0.35355338, %v4223_v21 }
0x1320   : > { %v2521_v23 = vpop.f32.mrf.mxu0 }
0x1321   : > { %v2530_v25 = vmul.f32 0.35355338, %v2521_v23  ;;  %v2533_v27 = vsel %vm640_vm4, %v2531_v22, -1e+30 }
0x1322   : > { %2536 = vmax.xlane.f32.xlu0 %v2533_v27 }
0x1323   : > { %v2532_v59 = vsel %vm640_vm4, %v2530_v25, -1e+30 }
0x1324   : > { %2534 = vmax.xlane.f32.xlu1 %v2532_v59 }
0x13ab   : > { %v2537_v60 = vpop.xlane.xlu0 %2536 }
0x13ac   : > { %v2539_v61 = vsub.f32 %v2533_v27, %v2537_v60 }
0x13ad   : > { %v2535_v13 = vpop.xlane.xlu1 %2534 }
0x13ae   : > { %v2542_v16 = vmul.f32 1.442695, %v2539_v61  ;;  %v2538_v46 = vsub.f32 %v2532_v59, %v2535_v13 }
0x13b0   : > { %4466 = vpow2.f32 %v2542_v16  ;;  %v2540_v51 = vmul.f32 1.442695, %v2538_v46 }
0x13b2   : > { %4468 = vpow2.f32 %v2540_v51 }
0x13bd   : > { %v4467_v2 = vpop.eup %4466 }
0x13be   : > { %2546 = vadd.xlane.f32.xlu1 %v4467_v2 }
0x13bf   : > { %v4469_v3 = vpop.eup %4468 }
0x13c0   : > { %2544 = vadd.xlane.f32.xlu0 %v4469_v3 }
0x13cf   : > { %2715 = vrot.lane.b32.xlu1 %v5029_v50, %s4648_s20 }
0x13d6   : > { %2713 = vrot.lane.b32.xlu0 %v5009_v47, %s4648_s20  ;;  %s4649_s20 = smov [#allocation7]  }
0x13d7   : > { %s4530_s29 = sshll.u32 %s4649_s20, 4  ;;  %s4531_s29 = int_to_ptr.vmem [resolvable:$false] %s4530_s29 }
0x13d8   : > { %p4533_p3 = scmp.lt.s32.totalorder %s6048_s23, %s4531_s29 }
0x1447   : > { %v2547_v9 = vpop.xlane.xlu1 %2546 }
0x1448   : > { %4470 = vrcp.f32 %v2547_v9 }
0x1449   : > { %v2545_v12 = vpop.xlane.xlu0 %2544 }
0x144a   : > { %4472 = vrcp.f32 %v2545_v12 }
0x144d   : > { %v2714_v19 = vpop.permute.xlu0 %2713 }
0x1455   : > { %v4471_v14 = vpop.eup %4470 }
0x1456   : > { %v2551_v15 = vmul.f32 %v4471_v14, %v4467_v2 }
0x1457   : > { %v4473_v17 = vpop.eup %4472 }
0x1458   : > { %v2550_v18 = vmul.f32 %v4473_v17, %v4469_v3  ;;  %3331 = vst [vmem:[%s5133_s19 + $0x58] sm:$0xff] %v2551_v15 }
0x145a   : > { %3330 = vst [vmem:[%s5133_s19 + $0x50] sm:$0xff] %v2550_v18  ;;  %4256 = vmatprep.mubr.f32.mxu1 %v2550_v18 }
0x145b   : > { %4257 = vmatmul.mubr.f32.vlgmr.msra.gmra.mxu1 %v2551_v15 }
0x145c   : > { %4260 = vmatpush3.msra.mxu1 %v646_v5 }
0x145d   : > { %4264 = vmatprep.subr.msk.mxu1 %vm649_vm2, %v5483_v28 }
0x151b   : > { %v4258_v47 = vpop.f32.mrf.mxu1 }
0x151d   : > { %v2621_v50 = vpop.f32.mrf.mxu1 }
0x151e   : > { %4261 = vmatprep.mubr.msk.f32.mxu1 %vm649_vm2, %v2621_v50 }
0x151f   : > { %4262 = vmatmul.mubr.msk.f32.vlgmr.msra.gmra.mxu1 %vm649_vm2, %v4258_v47 }
0x1520   : > { %4265 = vmatpush3.xpose.msk.msra.mxu1 %vm649_vm2, %v5483_v28  ;;  %4296 = vmatprep.mubr.msk.f32.mxu1 %vm649_vm2, %v2714_v19  ;;  %v2716_v28 = vpop.permute.xlu1 %2715 }
0x1521   : > { %4266 = vmatprep.subr.msk.mxu1 %vm649_vm2, %v5487_v29 }
0x1524   : > { %4267 = vmatpush3.xpose.msk.msra.mxu1 %vm649_vm2, %v5487_v29 }
0x1525   : > { %4268 = vmatprep.subr.msk.mxu1 %vm649_vm2, %v5489_v30 }
0x1528   : > { %4269 = vmatpush3.xpose.msk.msra.mxu1 %vm649_vm2, %v5489_v30 }
0x1529   : > { %4270 = vmatprep.subr.msk.mxu1 %vm649_vm2, %v5514_v0 }
0x152c   : > { %4271 = vmatpush3.xpose.msk.msra.mxu1 %vm649_vm2, %v5514_v0 }
0x152d   : > { %4272 = vmatprep.subr.msk.mxu1 %vm649_vm2, %v5491_v31 }
0x1530   : > { %4273 = vmatpush3.xpose.msk.msra.mxu1 %vm649_vm2, %v5491_v31 }
0x1531   : > { %4274 = vmatprep.subr.msk.mxu1 %vm649_vm2, %v5524_v4 }
0x1534   : > { %4275 = vmatpush3.xpose.msk.msra.mxu1 %vm649_vm2, %v5524_v4 }
0x1535   : > { %4276 = vmatprep.subr.msk.mxu1 %vm649_vm2, %v5493_v32 }
0x1538   : > { %4277 = vmatpush3.xpose.msk.msra.mxu1 %vm649_vm2, %v5493_v32 }
0x1539   : > { %4278 = vmatprep.subr.msk.mxu1 %vm649_vm2, %v5534_v6 }
0x153c   : > { %4279 = vmatpush3.xpose.msk.msra.mxu1 %vm649_vm2, %v5534_v6 }
0x153d   : > { %4280 = vmatprep.subr.msk.mxu1 %vm649_vm2, %v5495_v33 }
0x1540   : > { %4281 = vmatpush3.xpose.msk.msra.mxu1 %vm649_vm2, %v5495_v33 }
0x1541   : > { %4282 = vmatprep.subr.msk.mxu1 %vm649_vm2, %v5544_v7 }
0x1544   : > { %4283 = vmatpush3.xpose.msk.msra.mxu1 %vm649_vm2, %v5544_v7 }
0x1545   : > { %4284 = vmatprep.subr.msk.mxu1 %vm649_vm2, %v5497_v34 }
0x1548   : > { %4285 = vmatpush3.xpose.msk.msra.mxu1 %vm649_vm2, %v5497_v34 }
0x1549   : > { %4286 = vmatprep.subr.msk.mxu1 %vm649_vm2, %v5554_v8 }
0x154c   : > { %4287 = vmatpush3.xpose.msk.msra.mxu1 %vm649_vm2, %v5554_v8 }
0x154d   : > { %4288 = vmatprep.subr.msk.mxu1 %vm649_vm2, %v5499_v48 }
0x1550   : > { %4289 = vmatpush3.xpose.msk.msra.mxu1 %vm649_vm2, %v5499_v48 }
0x1551   : > { %4290 = vmatprep.subr.msk.mxu1 %vm649_vm2, %v5564_v10 }
0x1554   : > { %4291 = vmatpush3.xpose.msk.msra.mxu1 %vm649_vm2, %v5564_v10 }
0x1555   : > { %4292 = vmatprep.subr.msk.mxu1 %vm649_vm2, %v5501_v49 }
0x1558   : > { %4293 = vmatpush3.xpose.msk.msra.mxu1 %vm649_vm2, %v5501_v49 }
0x1559   : > { %4294 = vmatprep.subr.msk.mxu1 %vm649_vm2, %v5574_v11 }
0x155c   : > { %4295 = vmatpush3.xpose.msk.msra.mxu1 %vm649_vm2, %v5574_v11 }
0x155f   : > { %4297 = vmatmul.mubr.msk.f32.vlgmr.msra.gmra.mxu1 %vm649_vm2, %v2716_v28 }
0x15df   : > { %v4263_v29 = vpop.f32.mrf.mxu1 }
0x15e0   : > { %v6025_v30 = vadd.f32 %v4263_v29, %v5940_v36 }
0x15e1   : > { %v2702_v31 = vpop.f32.mrf.mxu1 }
0x15e2   : > { %v6028_v32 = vadd.f32 %v2702_v31, %v5943_v38 }
0x161f   : > { %v4298_v33 = vpop.f32.mrf.mxu1 }
0x1620   : > { %v2797_v34 = vmul.f32 0.35355338, %v4298_v33 }
0x1621   : > { %v2787_v48 = vpop.f32.mrf.mxu1 }
0x1622   : > { %v2796_v49 = vmul.f32 0.35355338, %v2787_v48  ;;  %v2799_v0 = vsel %vm640_vm4, %v2797_v34, -1e+30 }
0x1623   : > { %2802 = vmax.xlane.f32.xlu0 %v2799_v0 }
0x1624   : > { %v2798_v4 = vsel %vm640_vm4, %v2796_v49, -1e+30 }
0x1625   : > { %2800 = vmax.xlane.f32.xlu1 %v2798_v4 }
0x16ac   : > { %v2803_v6 = vpop.xlane.xlu0 %2802 }
0x16ad   : > { %v2805_v7 = vsub.f32 %v2799_v0, %v2803_v6 }
0x16ae   : > { %v2801_v8 = vpop.xlane.xlu1 %2800 }
0x16af   : > { %v2808_v10 = vmul.f32 1.442695, %v2805_v7  ;;  %v2804_v11 = vsub.f32 %v2798_v4, %v2801_v8 }
0x16b1   : > { %4474 = vpow2.f32 %v2808_v10  ;;  %v2806_v20 = vmul.f32 1.442695, %v2804_v11 }
0x16b3   : > { %4476 = vpow2.f32 %v2806_v20 }
0x16be   : > { %v4475_v35 = vpop.eup %4474 }
0x16bf   : > { %2812 = vadd.xlane.f32.xlu1 %v4475_v35 }
0x16c0   : > { %v4477_v40 = vpop.eup %4476 }
0x16c1   : > { %2810 = vadd.xlane.f32.xlu0 %v4477_v40 }
0x1748   : > { %v2813_v24 = vpop.xlane.xlu1 %2812 }
0x1749   : > { %4478 = vrcp.f32 %v2813_v24 }
0x174a   : > { %v2811_v26 = vpop.xlane.xlu0 %2810 }
0x174b   : > { %4480 = vrcp.f32 %v2811_v26 }
0x1756   : > { %v4479_v42 = vpop.eup %4478 }
0x1757   : > { %v2817_v41 = vmul.f32 %v4479_v42, %v4475_v35 }
0x1758   : > { %v4481_v43 = vpop.eup %4480 }
0x1759   : > { %v2816_v44 = vmul.f32 %v4481_v43, %v4477_v40  ;;  %3353 = vst [vmem:[%s5133_s19 + $0x78] sm:$0xff] %v2817_v41 }
0x175b   : > { %3352 = vst [vmem:[%s5133_s19 + $0x70] sm:$0xff] %v2816_v44  ;;  %4331 = vmatprep.mubr.f32.mxu0 %v2816_v44  ;;  %s4532_s19 = scalar_lea.vmem %s4531_s29, 4096 }
0x175c   : > { %4332 = vmatmul.mubr.f32.vlgmr.msra.gmra.mxu0 %v2817_v41  ;;  %p4534_p5 = scmp.lt.s32.totalorder %s4532_s19, %s4526_s15 }
0x175d   : > { %4335 = vmatpush3.msra.mxu0 %v648_v53 }
0x175e   : > { %p4535_p6 = por %p4534_p5, %p4533_p3 }
0x1760   : > { %p4536_p7 = pnand %p4535_p6, %p4529_p1 }
0x181c   : > { %v4333_v45 = vpop.f32.mrf.mxu0 }
0x181e   : > { %v2887_v52 = vpop.f32.mrf.mxu0 }
0x181f   : > { %4336 = vmatprep.mubr.msk.f32.mxu0 %vm649_vm2, %v2887_v52 }
0x1820   : > { %4337 = vmatmul.mubr.msk.f32.vlgmr.msra.gmra.mxu0 %vm649_vm2, %v4333_v45 }
0x1821   : > { %4539 = shalt.err (!%p4536_p7)
}
0x1822   : > { %s4540_s16 = scalar_lea.hbm %s6046_s27, 2048  ;;  %s4544_s21 = scalar_lea.hbm %s6149_s9, 4096 }
0x1823   : > { %p4541_p10 = scmp.ne.s32.totalorder %s6046_s27, %s4540_s16  ;;  %p4545_p2 = scmp.lt.s32.totalorder %s6046_s27, %s6149_s9 }
0x1824   : > { %p4546_p12 = scmp.lt.s32.totalorder %s4544_s21, %s4540_s16 }
0x1825   : > { %p4542_p4 = pnand %p4541_p10, %p4754_p9 }
0x1826   : > { %p4547_p8 = por %p4546_p12, %p4545_p2 }
0x1827   : > { %p4543_p13 = pneg %p4542_p4 }
0x1829   : > { %p4548_p0 = pnand %p4547_p8, %p4543_p13 }
0x182b   : > { %4551 = shalt.err (!%p4548_p0)
}
0x182c   : > { %s4650_s15 = smov 128   ;;  %s4651_s20 = smov 8   ;;  %v3356_v55 = vld [vmem:[%s6147_s7] ss:$0 sm:$0xff] }
0x182d   : > { %4342 = dma.vmem_to_hbm [thread:$0]  (%p4754_p9), %s6048_s23, 2048, %s6046_s27, %s2996_s17, %s4650_s15, %s4650_s15, %s4651_s20  }
0x182e   : > { %s3367_s16 = sshll.u32 %s4628_s12, 8  ;;  %s6161_s18 = sshll.u32 %s4787_s13, 4 }
0x182f   : > { %s389_s28 = scalar_lea.vmem [#allocation6], %s6161_s18  ;;  %s6088_s17 = scalar_lea.hbm %s6148_s8, %s3367_s16 }
0x1830   : > { %s3011_s21 = sshll.u32 %s389_s28, 4  ;;  %s2991_s12 = scalar_lea.sflag [#allocation5], %s4787_s13  ;;  %s6090_s21 = int_to_ptr.vmem [resolvable:$true] %s3011_s21 }
0x1831   : > { %s4552_s26 = scalar_lea.vmem %s6090_s21, 256  ;;  %s4652_s25 = smov [#allocation6]  }
0x1832   : > { %p4553_p1 = scmp.ne.s32.totalorder %s6090_s21, %s4552_s26  ;;  %s4556_s29 = sshll.u32 %s4652_s25, 4  ;;  %s4557_s29 = int_to_ptr.vmem [resolvable:$false] %s4556_s29 }
0x1833   : > { %s4558_s19 = scalar_lea.vmem %s4557_s29, 512  ;;  %p4559_p6 = scmp.lt.s32.totalorder %s6090_s21, %s4557_s29 }
0x1834   : > { %p4554_p3 = pnand %p4553_p1, %p4754_p9  ;;  %p4560_p7 = scmp.lt.s32.totalorder %s4558_s19, %s4552_s26 }
0x1836   : > { %p4555_p5 = pneg %p4554_p3  ;;  %p4561_p10 = por %p4560_p7, %p4559_p6 }
0x1838   : > { %p4562_p4 = pnand %p4561_p10, %p4555_p5 }
0x18e0   : > { %v4338_v54 = vpop.f32.mrf.mxu0 }
0x18e1   : > { %v2978_v56 = vadd.f32 %v4338_v54, %v6025_v30 }
0x18e2   : > { %v2968_v57 = vpop.f32.mrf.mxu0 }
0x18e3   : > { %v2987_v58 = vadd.f32 %v3356_v55, %v2978_v56  ;;  %v2977_v62 = vadd.f32 %v2968_v57, %v6028_v32 }
0x18e5   : > { %2989 = vst.msk [vmem:[%s389_s28 + $0x8] sm:$0xff] %vm422_vm1, %v2987_v58  ;;  %v2986_v63 = vadd.f32 %v3356_v55, %v2977_v62 }
0x18e7   : > { %2988 = vst.msk [vmem:[%s389_s28] sm:$0xff] %vm422_vm1, %v2986_v63 }
0x18e8   : > { %4565 = shalt.err (!%p4562_p4)
}
0x18e9   : > { %s4566_s16 = scalar_lea.hbm %s6088_s17, 256  ;;  %s4570_s28 = scalar_lea.hbm %s6148_s8, 512 }
0x18ea   : > { %p4567_p13 = scmp.ne.s32.totalorder %s6088_s17, %s4566_s16  ;;  %p4571_p8 = scmp.lt.s32.totalorder %s6088_s17, %s6148_s8 }
0x18eb   : > { %p4572_p0 = scmp.lt.s32.totalorder %s4570_s28, %s4566_s16 }
0x18ec   : > { %p4568_p2 = pnand %p4567_p13, %p4754_p9 }
0x18ed   : > { %p4573_p1 = por %p4572_p0, %p4571_p8 }
0x18ee   : > { %p4569_p12 = pneg %p4568_p2 }
0x18f0   : > { %p4574_p3 = pnand %p4573_p1, %p4569_p12 }
0x18f2   : > { %4577 = shalt.err (!%p4574_p3)
}
0x18f3   : > { %4341 = dma.vmem_to_hbm [thread:$0]  (%p4754_p9), %s6090_s21, 256, %s6088_s17, %s2991_s12, %s4650_s15, %s4650_s15, %s4651_s20  }
0x18f4 PF: > { %s3044_s26 = sand.u32 1, %s4616_s30   ;;  %p6162_p5 = scmp.ge.s32.totalorder %s4636_s14, 2 }
0x18f5   : > { %s3045_s25 = scalar_lea.sflag [#allocation5], %s3044_s26 }
0x18f6   : > { %p4350_p6 = pnand %p6162_p5, %p4761_p11 }
0x18f8   : > { %p4351_p7 = pneg %p4350_p6 }
0x18fa   : > { %4607 = dma.done.wait (%p4351_p7), %s3045_s25, 256  }
0x18fb   : > { %4609 = vsyncadd (%p4351_p7), %s3045_s25, 4294967040  ;;  %s3054_s29 = scalar_lea.sflag [#allocation8], %s3044_s26 }
0x18fc   : > { %4611 = dma.done.wait (%p4351_p7), %s3054_s29, 2048  }
0x18fd   : > { %4613 = vsyncadd (%p4351_p7), %s3054_s29, 4294965248  ;;  %s29_s14 = sadd.s32 1, %s4636_s14   ;;  %s6163_s22 = sld [smem:[#allocation14_spill]] }
0x18fe   : > { %p26_p10 = scmp.ge.s32.totalorder %s29_s14, 4   ;;  %s6164_s12 = sld [smem:[#allocation12_spill]] }
0x18ff   : > { %s6165_s13 = sld [smem:[#allocation13_spill]]  ;;  %s6166_s30 = smov %s4620_s10 }
0x1900   : > { %s6167_s10 = smov %s4624_s11  ;;  %28 = sbr.rel (!%p26_p10) target bundleno = 8 (0x8), region = 124 }
0x1903   : > { %s6168_s11 = smov %s6163_s22 }
0x1905   :  { %3059 = vsyncpa [#allocation4], 1 }
0x1906   :  { %3061 = vsyncpa [#allocation4 + $0x1], 1 }
0x1907   :  { %3062 = vsyncpa [#allocation5], 1 }
0x1908   :  { %3064 = vsyncpa [#allocation5 + $0x1], 1 }
0x1909   :  { %3065 = vsyncpa [#allocation8], 1 }
0x190a   :  { %3067 = vsyncpa [#allocation8 + $0x1], 1 }

</bundles_post_ra>
